<compile_context>
chip_gen: v7x
topology: tpu7x:2x2x1
jax: 0.10.0
libtpu: 0.0.40
codegen_flags: <defaults>
</compile_context>

<pallas_src>
import jax
import jax.numpy as jnp
from jax import lax
from jax.experimental import pallas as pl
from jax.experimental.pallas import tpu as pltpu


def _propose_t_kernel(x_ref, adj_ref, pool_ref,
                      w1_ref, wa1s_ref, wa1d_ref, b1_ref,
                      w2_ref, wa2s_ref, wa2d_ref, b2_ref,
                      wl_ref, bl_ref, out_ref):
    """Fused conv1 -> conv2 -> global_mean_pool -> lin2 -> log_softmax.

    x_ref    : [N, F]        node features
    adj_ref  : [N, N]        adj[i, j] = 1.0 iff edge j -> i (incl. self-loops)
    pool_ref : [B, N]        pool_scaled[b, n] = 1/|graph b| iff batch[n] == b
    w*_ref   : [Fin, H*D]    head-fused projection weights
    wa*s/d   : [Fin, H]      attention vectors folded into the projection
    b*_ref   : [1, H*D]      GATConv bias (concat layout)
    wl/bl    : [D, C]/[1, C] lin2
    out_ref  : [B, C]        log-probabilities
    """
    x = x_ref[...]
    adj = adj_ref[...]
    neg = jnp.float32(-1e30)

    def gat(xin, w_flat, wa_s, wa_d, bias):
        num_heads = wa_s.shape[1]
        d = w_flat.shape[1] // num_heads
        # One lane-dense projection for all heads: [N, H*D].
        xh = jnp.dot(xin, w_flat, preferred_element_type=jnp.float32)
        # alpha_dst[i, h] = <xh[i, h, :], a_dst[h]>  (columns), computed from xin
        # via the folded weights; alpha_src produced directly in row layout
        # ([H, N]) to avoid any in-kernel transpose.
        alpha_dst = jnp.dot(xin, wa_d, preferred_element_type=jnp.float32)   # [N, H]
        alpha_src = lax.dot_general(
            wa_s, xin, (((0,), (1,)), ((), ())),
            preferred_element_type=jnp.float32)                              # [H, N]
        outs = []
        for h in range(num_heads):                 # static unroll over heads
            e = alpha_dst[:, h:h + 1] + alpha_src[h:h + 1, :]   # [N, N]
            e = jnp.where(e > 0, e, 0.2 * e)                    # LeakyReLU(0.2)
            e = jnp.where(adj > 0, e, neg)                      # mask non-edges
            m = jnp.max(e, axis=1, keepdims=True)               # finite: self-loops
            p = jnp.exp(e - m)                                  # non-edges -> 0
            denom = jnp.sum(p, axis=1, keepdims=True)
            agg = jnp.dot(p, xh[:, h * d:(h + 1) * d],
                          preferred_element_type=jnp.float32)   # [N, D]
            # Deferred normalization; reciprocal goes to the EUP slot.
            outs.append(agg * pl.reciprocal(denom, approx=True))
        cat = outs[0] if num_heads == 1 else jnp.concatenate(outs, axis=-1)
        return jnp.maximum(cat + bias, 0.0)                     # bias + ReLU

    # conv1 (+ReLU) -> [N, H*D]; stays VMEM/vreg resident.
    x1 = gat(x, w1_ref[...], wa1s_ref[...], wa1d_ref[...], b1_ref[...])
    # conv2 (+ReLU) -> [N, D]; K = H*D = 256 matmul reads x1 straight from VMEM.
    x2 = gat(x1, w2_ref[...], wa2s_ref[...], wa2d_ref[...], b2_ref[...])

    # global_mean_pool (counts pre-folded into pool_ref) -> lin2 -> log_softmax.
    pooled = jnp.dot(pool_ref[...], x2, preferred_element_type=jnp.float32)  # [B, D]
    logits = jnp.dot(pooled, wl_ref[...],
                     preferred_element_type=jnp.float32) + bl_ref[...]       # [B, C]
    m = jnp.max(logits, axis=-1, keepdims=True)
    z = logits - m
    lse = jnp.log(jnp.sum(jnp.exp(z), axis=-1, keepdims=True))
    out_ref[...] = z - lse


def propose_t_forward(params, x, adj, pool_scaled):
    num_graphs = pool_scaled.shape[0]
    num_classes = params["wl"].shape[1]

    def flat_w(w):                       # [H, Fin, D] -> [Fin, H*D] (concat layout)
        h, f, d = w.shape
        return jnp.transpose(w, (1, 0, 2)).reshape(f, h * d)

    def fold_att(w, a):                  # [H, Fin, D], [H, 1, D] -> [Fin, H]
        return jnp.einsum('hfd,hd->fh', w, a[:, 0, :])

    args = (
        x, adj, pool_scaled,
        flat_w(params["w1"]),
        fold_att(params["w1"], params["asrc1"]),
        fold_att(params["w1"], params["adst1"]),
        params["b1"],
        flat_w(params["w2"]),
        fold_att(params["w2"], params["asrc2"]),
        fold_att(params["w2"], params["adst2"]),
        params["b2"],
        params["wl"],
        params["bl"],
    )
    return pl.pallas_call(
        _propose_t_kernel,
        out_shape=jax.ShapeDtypeStruct((num_graphs, num_classes), jnp.float32),
        in_specs=[pl.BlockSpec(memory_space=pltpu.MemorySpace.VMEM)] * len(args),
        out_specs=pl.BlockSpec(memory_space=pltpu.MemorySpace.VMEM),
    )(*args)


if __name__ == "__main__":
    N, FEAT, HIDDEN, HEADS, NUM_CLASSES, NUM_GRAPHS = 16, 8, 32, 8, 4, 2

    key = jax.random.PRNGKey(0)
    ks = jax.random.split(key, 9)

    x = jax.random.normal(ks[0], (N, FEAT), jnp.float32)

    # Two 8-node ring graphs (both edge directions); batch = [0]*8 + [1]*8.
    src, dst = [], []
    nodes_per_graph = N // NUM_GRAPHS
    for g in range(NUM_GRAPHS):
        base = g * nodes_per_graph
        for i in range(nodes_per_graph):
            j = (i + 1) % nodes_per_graph
            src += [base + i, base + j]
            dst += [base + j, base + i]
    edge_index = jnp.array([src, dst], dtype=jnp.int32)          # [2, E]
    batch = jnp.concatenate([jnp.full((nodes_per_graph,), g, jnp.int32)
                             for g in range(NUM_GRAPHS)])

    # Dense adjacency mask: adj[i, j] = 1 iff message j -> i; add self-loops
    # (GATConv default add_self_loops=True).
    adj = jnp.zeros((N, N), jnp.float32).at[edge_index[1], edge_index[0]].set(1.0)
    adj = jnp.maximum(adj, jnp.eye(N, dtype=jnp.float32))

    # One-hot graph membership with 1/count pre-folded (global_mean_pool).
    pool = (batch[None, :] == jnp.arange(NUM_GRAPHS)[:, None]).astype(jnp.float32)
    counts = jnp.maximum(jnp.sum(pool, axis=1, keepdims=True), 1.0)
    pool_scaled = pool / counts

    s = 0.1  # deterministic synthetic parameter init
    params = {
        # conv1: GATConv(FEAT -> HIDDEN, heads=HEADS, concat=True)
        "w1":    s * jax.random.normal(ks[1], (HEADS, FEAT, HIDDEN), jnp.float32),
        "asrc1": s * jax.random.normal(ks[2], (HEADS, 1, HIDDEN), jnp.float32),
        "adst1": s * jax.random.normal(ks[3], (HEADS, 1, HIDDEN), jnp.float32),
        "b1":    jnp.zeros((1, HEADS * HIDDEN), jnp.float32),
        # conv2: GATConv(HEADS*HIDDEN -> HIDDEN, heads=1)
        "w2":    s * jax.random.normal(ks[4], (1, HEADS * HIDDEN, HIDDEN), jnp.float32),
        "asrc2": s * jax.random.normal(ks[5], (1, 1, HIDDEN), jnp.float32),
        "adst2": s * jax.random.normal(ks[6], (1, 1, HIDDEN), jnp.float32),
        "b2":    jnp.zeros((1, HIDDEN), jnp.float32),
        # lin2: Linear(HIDDEN -> NUM_CLASSES)
        "wl":    s * jax.random.normal(ks[7], (HIDDEN, NUM_CLASSES), jnp.float32),
        "bl":    s * jax.random.normal(ks[8], (1, NUM_CLASSES), jnp.float32),
    }

    out = jax.jit(propose_t_forward)(params, x, adj, pool_scaled)
    jax.block_until_ready(out)
    assert out.shape == (NUM_GRAPHS, NUM_CLASSES)
    print("KERNEL_OK")
</pallas_src>

<mosaic_0001>
module attributes {stable_mosaic.version = 11 : i64} {
  func.func @_propose_t_kernel(%arg0: memref<16x8xf32, #tpu.memory_space<vmem>>, %arg1: memref<16x16xf32, #tpu.memory_space<vmem>>, %arg2: memref<2x16xf32, #tpu.memory_space<vmem>>, %arg3: memref<8x256xf32, #tpu.memory_space<vmem>>, %arg4: memref<8x8xf32, #tpu.memory_space<vmem>>, %arg5: memref<8x8xf32, #tpu.memory_space<vmem>>, %arg6: memref<1x256xf32, #tpu.memory_space<vmem>>, %arg7: memref<256x32xf32, #tpu.memory_space<vmem>>, %arg8: memref<256x1xf32, #tpu.memory_space<vmem>>, %arg9: memref<256x1xf32, #tpu.memory_space<vmem>>, %arg10: memref<1x32xf32, #tpu.memory_space<vmem>>, %arg11: memref<32x4xf32, #tpu.memory_space<vmem>>, %arg12: memref<1x4xf32, #tpu.memory_space<vmem>>, %arg13: memref<2x4xf32, #tpu.memory_space<vmem>>) attributes {dimension_semantics = [], scalar_prefetch = 0 : i64, scratch_operands = 0 : i64, tpu.core_type = #tpu.core_type<tc>} {
    %c0 = arith.constant 0 : index
    %c0_0 = arith.constant 0 : index
    %0 = vector.load %arg0[%c0, %c0_0] : memref<16x8xf32, #tpu.memory_space<vmem>>, vector<16x8xf32>
    %c0_1 = arith.constant 0 : index
    %c0_2 = arith.constant 0 : index
    %1 = vector.load %arg1[%c0_1, %c0_2] : memref<16x16xf32, #tpu.memory_space<vmem>>, vector<16x16xf32>
    %c0_3 = arith.constant 0 : index
    %c0_4 = arith.constant 0 : index
    %2 = vector.load %arg3[%c0_3, %c0_4] : memref<8x256xf32, #tpu.memory_space<vmem>>, vector<8x256xf32>
    %c0_5 = arith.constant 0 : index
    %c0_6 = arith.constant 0 : index
    %3 = vector.load %arg4[%c0_5, %c0_6] : memref<8x8xf32, #tpu.memory_space<vmem>>, vector<8x8xf32>
    %c0_7 = arith.constant 0 : index
    %c0_8 = arith.constant 0 : index
    %4 = vector.load %arg5[%c0_7, %c0_8] : memref<8x8xf32, #tpu.memory_space<vmem>>, vector<8x8xf32>
    %c0_9 = arith.constant 0 : index
    %c0_10 = arith.constant 0 : index
    %5 = vector.load %arg6[%c0_9, %c0_10] : memref<1x256xf32, #tpu.memory_space<vmem>>, vector<1x256xf32>
    %cst = arith.constant dense<0.000000e+00> : vector<16x256xf32>
    %6 = tpu.matmul %0, %2, %cst {dimension_numbers = #tpu.dot_dimension_numbers<[1], [0], [0], [1], [0, 0, 1, 1], [], []>} : vector<16x8xf32>, vector<8x256xf32>, vector<16x256xf32> -> vector<16x256xf32>
    %cst_11 = arith.constant dense<0.000000e+00> : vector<16x8xf32>
    %7 = tpu.matmul %0, %4, %cst_11 {dimension_numbers = #tpu.dot_dimension_numbers<[1], [0], [0], [1], [0, 0, 1, 1], [], []>} : vector<16x8xf32>, vector<8x8xf32>, vector<16x8xf32> -> vector<16x8xf32>
    %cst_12 = arith.constant dense<0.000000e+00> : vector<8x16xf32>
    %8 = tpu.matmul %3, %0, %cst_12 {dimension_numbers = #tpu.dot_dimension_numbers<[0], [1], [1], [0], [0, 1, 1, 0], [], []>} : vector<8x8xf32>, vector<16x8xf32>, vector<8x16xf32> -> vector<8x16xf32>
    %9 = vector.extract_strided_slice %7 {offsets = [0, 0], sizes = [16, 1], strides = [1, 1]} : vector<16x8xf32> to vector<16x1xf32>
    %10 = vector.extract_strided_slice %8 {offsets = [0, 0], sizes = [1, 16], strides = [1, 1]} : vector<8x16xf32> to vector<1x16xf32>
    %11 = vector.broadcast %9 : vector<16x1xf32> to vector<16x16xf32>
    %12 = vector.broadcast %10 : vector<1x16xf32> to vector<16x16xf32>
    %13 = arith.addf %11, %12 : vector<16x16xf32>
    %cst_13 = arith.constant 0.000000e+00 : f32
    %14 = vector.broadcast %cst_13 : f32 to vector<16x16xf32>
    %15 = arith.cmpf ogt, %13, %14 : vector<16x16xf32>
    %cst_14 = arith.constant 2.000000e-01 : f32
    %16 = vector.broadcast %cst_14 : f32 to vector<16x16xf32>
    %17 = arith.mulf %16, %13 : vector<16x16xf32>
    %18 = arith.select %15, %13, %17 : vector<16x16xi1>, vector<16x16xf32>
    %cst_15 = arith.constant 0.000000e+00 : f32
    %19 = vector.broadcast %cst_15 : f32 to vector<16x16xf32>
    %20 = arith.cmpf ogt, %1, %19 : vector<16x16xf32>
    %cst_16 = arith.constant -1.000000e+30 : f32
    %21 = vector.broadcast %cst_16 : f32 to vector<16x16xf32>
    %22 = arith.select %20, %18, %21 : vector<16x16xi1>, vector<16x16xf32>
    %cst_17 = arith.constant dense<0xFF800000> : vector<16xf32>
    %23 = vector.multi_reduction <maximumf>, %22, %cst_17 [1] : vector<16x16xf32> to vector<16xf32>
    %24 = vector.shape_cast %23 : vector<16xf32> to vector<16x1xf32>
    %25 = vector.broadcast %24 : vector<16x1xf32> to vector<16x16xf32>
    %26 = arith.subf %22, %25 : vector<16x16xf32>
    %27 = math.exp %26 : vector<16x16xf32>
    %cst_18 = arith.constant dense<0.000000e+00> : vector<16xf32>
    %28 = vector.multi_reduction <add>, %27, %cst_18 [1] : vector<16x16xf32> to vector<16xf32>
    %29 = vector.shape_cast %28 : vector<16xf32> to vector<16x1xf32>
    %30 = vector.extract_strided_slice %6 {offsets = [0, 0], sizes = [16, 32], strides = [1, 1]} : vector<16x256xf32> to vector<16x32xf32>
    %cst_19 = arith.constant dense<0.000000e+00> : vector<16x32xf32>
    %31 = tpu.matmul %27, %30, %cst_19 {dimension_numbers = #tpu.dot_dimension_numbers<[1], [0], [0], [1], [0, 0, 1, 1], [], []>} : vector<16x16xf32>, vector<16x32xf32>, vector<16x32xf32> -> vector<16x32xf32>
    %32 = tpu.reciprocal %29 {approx = true} : vector<16x1xf32> -> vector<16x1xf32>
    %33 = vector.broadcast %32 : vector<16x1xf32> to vector<16x32xf32>
    %34 = arith.mulf %31, %33 : vector<16x32xf32>
    %35 = vector.extract_strided_slice %7 {offsets = [0, 1], sizes = [16, 1], strides = [1, 1]} : vector<16x8xf32> to vector<16x1xf32>
    %36 = vector.extract_strided_slice %8 {offsets = [1, 0], sizes = [1, 16], strides = [1, 1]} : vector<8x16xf32> to vector<1x16xf32>
    %37 = vector.broadcast %35 : vector<16x1xf32> to vector<16x16xf32>
    %38 = vector.broadcast %36 : vector<1x16xf32> to vector<16x16xf32>
    %39 = arith.addf %37, %38 : vector<16x16xf32>
    %cst_20 = arith.constant 0.000000e+00 : f32
    %40 = vector.broadcast %cst_20 : f32 to vector<16x16xf32>
    %41 = arith.cmpf ogt, %39, %40 : vector<16x16xf32>
    %cst_21 = arith.constant 2.000000e-01 : f32
    %42 = vector.broadcast %cst_21 : f32 to vector<16x16xf32>
    %43 = arith.mulf %42, %39 : vector<16x16xf32>
    %44 = arith.select %41, %39, %43 : vector<16x16xi1>, vector<16x16xf32>
    %cst_22 = arith.constant 0.000000e+00 : f32
    %45 = vector.broadcast %cst_22 : f32 to vector<16x16xf32>
    %46 = arith.cmpf ogt, %1, %45 : vector<16x16xf32>
    %cst_23 = arith.constant -1.000000e+30 : f32
    %47 = vector.broadcast %cst_23 : f32 to vector<16x16xf32>
    %48 = arith.select %46, %44, %47 : vector<16x16xi1>, vector<16x16xf32>
    %cst_24 = arith.constant dense<0xFF800000> : vector<16xf32>
    %49 = vector.multi_reduction <maximumf>, %48, %cst_24 [1] : vector<16x16xf32> to vector<16xf32>
    %50 = vector.shape_cast %49 : vector<16xf32> to vector<16x1xf32>
    %51 = vector.broadcast %50 : vector<16x1xf32> to vector<16x16xf32>
    %52 = arith.subf %48, %51 : vector<16x16xf32>
    %53 = math.exp %52 : vector<16x16xf32>
    %cst_25 = arith.constant dense<0.000000e+00> : vector<16xf32>
    %54 = vector.multi_reduction <add>, %53, %cst_25 [1] : vector<16x16xf32> to vector<16xf32>
    %55 = vector.shape_cast %54 : vector<16xf32> to vector<16x1xf32>
    %56 = vector.extract_strided_slice %6 {offsets = [0, 32], sizes = [16, 32], strides = [1, 1]} : vector<16x256xf32> to vector<16x32xf32>
    %cst_26 = arith.constant dense<0.000000e+00> : vector<16x32xf32>
    %57 = tpu.matmul %53, %56, %cst_26 {dimension_numbers = #tpu.dot_dimension_numbers<[1], [0], [0], [1], [0, 0, 1, 1], [], []>} : vector<16x16xf32>, vector<16x32xf32>, vector<16x32xf32> -> vector<16x32xf32>
    %58 = tpu.reciprocal %55 {approx = true} : vector<16x1xf32> -> vector<16x1xf32>
    %59 = vector.broadcast %58 : vector<16x1xf32> to vector<16x32xf32>
    %60 = arith.mulf %57, %59 : vector<16x32xf32>
    %61 = vector.extract_strided_slice %7 {offsets = [0, 2], sizes = [16, 1], strides = [1, 1]} : vector<16x8xf32> to vector<16x1xf32>
    %62 = vector.extract_strided_slice %8 {offsets = [2, 0], sizes = [1, 16], strides = [1, 1]} : vector<8x16xf32> to vector<1x16xf32>
    %63 = vector.broadcast %61 : vector<16x1xf32> to vector<16x16xf32>
    %64 = vector.broadcast %62 : vector<1x16xf32> to vector<16x16xf32>
    %65 = arith.addf %63, %64 : vector<16x16xf32>
    %cst_27 = arith.constant 0.000000e+00 : f32
    %66 = vector.broadcast %cst_27 : f32 to vector<16x16xf32>
    %67 = arith.cmpf ogt, %65, %66 : vector<16x16xf32>
    %cst_28 = arith.constant 2.000000e-01 : f32
    %68 = vector.broadcast %cst_28 : f32 to vector<16x16xf32>
    %69 = arith.mulf %68, %65 : vector<16x16xf32>
    %70 = arith.select %67, %65, %69 : vector<16x16xi1>, vector<16x16xf32>
    %cst_29 = arith.constant 0.000000e+00 : f32
    %71 = vector.broadcast %cst_29 : f32 to vector<16x16xf32>
    %72 = arith.cmpf ogt, %1, %71 : vector<16x16xf32>
    %cst_30 = arith.constant -1.000000e+30 : f32
    %73 = vector.broadcast %cst_30 : f32 to vector<16x16xf32>
    %74 = arith.select %72, %70, %73 : vector<16x16xi1>, vector<16x16xf32>
    %cst_31 = arith.constant dense<0xFF800000> : vector<16xf32>
    %75 = vector.multi_reduction <maximumf>, %74, %cst_31 [1] : vector<16x16xf32> to vector<16xf32>
    %76 = vector.shape_cast %75 : vector<16xf32> to vector<16x1xf32>
    %77 = vector.broadcast %76 : vector<16x1xf32> to vector<16x16xf32>
    %78 = arith.subf %74, %77 : vector<16x16xf32>
    %79 = math.exp %78 : vector<16x16xf32>
    %cst_32 = arith.constant dense<0.000000e+00> : vector<16xf32>
    %80 = vector.multi_reduction <add>, %79, %cst_32 [1] : vector<16x16xf32> to vector<16xf32>
    %81 = vector.shape_cast %80 : vector<16xf32> to vector<16x1xf32>
    %82 = vector.extract_strided_slice %6 {offsets = [0, 64], sizes = [16, 32], strides = [1, 1]} : vector<16x256xf32> to vector<16x32xf32>
    %cst_33 = arith.constant dense<0.000000e+00> : vector<16x32xf32>
    %83 = tpu.matmul %79, %82, %cst_33 {dimension_numbers = #tpu.dot_dimension_numbers<[1], [0], [0], [1], [0, 0, 1, 1], [], []>} : vector<16x16xf32>, vector<16x32xf32>, vector<16x32xf32> -> vector<16x32xf32>
    %84 = tpu.reciprocal %81 {approx = true} : vector<16x1xf32> -> vector<16x1xf32>
    %85 = vector.broadcast %84 : vector<16x1xf32> to vector<16x32xf32>
    %86 = arith.mulf %83, %85 : vector<16x32xf32>
    %87 = vector.extract_strided_slice %7 {offsets = [0, 3], sizes = [16, 1], strides = [1, 1]} : vector<16x8xf32> to vector<16x1xf32>
    %88 = vector.extract_strided_slice %8 {offsets = [3, 0], sizes = [1, 16], strides = [1, 1]} : vector<8x16xf32> to vector<1x16xf32>
    %89 = vector.broadcast %87 : vector<16x1xf32> to vector<16x16xf32>
    %90 = vector.broadcast %88 : vector<1x16xf32> to vector<16x16xf32>
    %91 = arith.addf %89, %90 : vector<16x16xf32>
    %cst_34 = arith.constant 0.000000e+00 : f32
    %92 = vector.broadcast %cst_34 : f32 to vector<16x16xf32>
    %93 = arith.cmpf ogt, %91, %92 : vector<16x16xf32>
    %cst_35 = arith.constant 2.000000e-01 : f32
    %94 = vector.broadcast %cst_35 : f32 to vector<16x16xf32>
    %95 = arith.mulf %94, %91 : vector<16x16xf32>
    %96 = arith.select %93, %91, %95 : vector<16x16xi1>, vector<16x16xf32>
    %cst_36 = arith.constant 0.000000e+00 : f32
    %97 = vector.broadcast %cst_36 : f32 to vector<16x16xf32>
    %98 = arith.cmpf ogt, %1, %97 : vector<16x16xf32>
    %cst_37 = arith.constant -1.000000e+30 : f32
    %99 = vector.broadcast %cst_37 : f32 to vector<16x16xf32>
    %100 = arith.select %98, %96, %99 : vector<16x16xi1>, vector<16x16xf32>
    %cst_38 = arith.constant dense<0xFF800000> : vector<16xf32>
    %101 = vector.multi_reduction <maximumf>, %100, %cst_38 [1] : vector<16x16xf32> to vector<16xf32>
    %102 = vector.shape_cast %101 : vector<16xf32> to vector<16x1xf32>
    %103 = vector.broadcast %102 : vector<16x1xf32> to vector<16x16xf32>
    %104 = arith.subf %100, %103 : vector<16x16xf32>
    %105 = math.exp %104 : vector<16x16xf32>
    %cst_39 = arith.constant dense<0.000000e+00> : vector<16xf32>
    %106 = vector.multi_reduction <add>, %105, %cst_39 [1] : vector<16x16xf32> to vector<16xf32>
    %107 = vector.shape_cast %106 : vector<16xf32> to vector<16x1xf32>
    %108 = vector.extract_strided_slice %6 {offsets = [0, 96], sizes = [16, 32], strides = [1, 1]} : vector<16x256xf32> to vector<16x32xf32>
    %cst_40 = arith.constant dense<0.000000e+00> : vector<16x32xf32>
    %109 = tpu.matmul %105, %108, %cst_40 {dimension_numbers = #tpu.dot_dimension_numbers<[1], [0], [0], [1], [0, 0, 1, 1], [], []>} : vector<16x16xf32>, vector<16x32xf32>, vector<16x32xf32> -> vector<16x32xf32>
    %110 = tpu.reciprocal %107 {approx = true} : vector<16x1xf32> -> vector<16x1xf32>
    %111 = vector.broadcast %110 : vector<16x1xf32> to vector<16x32xf32>
    %112 = arith.mulf %109, %111 : vector<16x32xf32>
    %113 = vector.extract_strided_slice %7 {offsets = [0, 4], sizes = [16, 1], strides = [1, 1]} : vector<16x8xf32> to vector<16x1xf32>
    %114 = vector.extract_strided_slice %8 {offsets = [4, 0], sizes = [1, 16], strides = [1, 1]} : vector<8x16xf32> to vector<1x16xf32>
    %115 = vector.broadcast %113 : vector<16x1xf32> to vector<16x16xf32>
    %116 = vector.broadcast %114 : vector<1x16xf32> to vector<16x16xf32>
    %117 = arith.addf %115, %116 : vector<16x16xf32>
    %cst_41 = arith.constant 0.000000e+00 : f32
    %118 = vector.broadcast %cst_41 : f32 to vector<16x16xf32>
    %119 = arith.cmpf ogt, %117, %118 : vector<16x16xf32>
    %cst_42 = arith.constant 2.000000e-01 : f32
    %120 = vector.broadcast %cst_42 : f32 to vector<16x16xf32>
    %121 = arith.mulf %120, %117 : vector<16x16xf32>
    %122 = arith.select %119, %117, %121 : vector<16x16xi1>, vector<16x16xf32>
    %cst_43 = arith.constant 0.000000e+00 : f32
    %123 = vector.broadcast %cst_43 : f32 to vector<16x16xf32>
    %124 = arith.cmpf ogt, %1, %123 : vector<16x16xf32>
    %cst_44 = arith.constant -1.000000e+30 : f32
    %125 = vector.broadcast %cst_44 : f32 to vector<16x16xf32>
    %126 = arith.select %124, %122, %125 : vector<16x16xi1>, vector<16x16xf32>
    %cst_45 = arith.constant dense<0xFF800000> : vector<16xf32>
    %127 = vector.multi_reduction <maximumf>, %126, %cst_45 [1] : vector<16x16xf32> to vector<16xf32>
    %128 = vector.shape_cast %127 : vector<16xf32> to vector<16x1xf32>
    %129 = vector.broadcast %128 : vector<16x1xf32> to vector<16x16xf32>
    %130 = arith.subf %126, %129 : vector<16x16xf32>
    %131 = math.exp %130 : vector<16x16xf32>
    %cst_46 = arith.constant dense<0.000000e+00> : vector<16xf32>
    %132 = vector.multi_reduction <add>, %131, %cst_46 [1] : vector<16x16xf32> to vector<16xf32>
    %133 = vector.shape_cast %132 : vector<16xf32> to vector<16x1xf32>
    %134 = vector.extract_strided_slice %6 {offsets = [0, 128], sizes = [16, 32], strides = [1, 1]} : vector<16x256xf32> to vector<16x32xf32>
    %cst_47 = arith.constant dense<0.000000e+00> : vector<16x32xf32>
    %135 = tpu.matmul %131, %134, %cst_47 {dimension_numbers = #tpu.dot_dimension_numbers<[1], [0], [0], [1], [0, 0, 1, 1], [], []>} : vector<16x16xf32>, vector<16x32xf32>, vector<16x32xf32> -> vector<16x32xf32>
    %136 = tpu.reciprocal %133 {approx = true} : vector<16x1xf32> -> vector<16x1xf32>
    %137 = vector.broadcast %136 : vector<16x1xf32> to vector<16x32xf32>
    %138 = arith.mulf %135, %137 : vector<16x32xf32>
    %139 = vector.extract_strided_slice %7 {offsets = [0, 5], sizes = [16, 1], strides = [1, 1]} : vector<16x8xf32> to vector<16x1xf32>
    %140 = vector.extract_strided_slice %8 {offsets = [5, 0], sizes = [1, 16], strides = [1, 1]} : vector<8x16xf32> to vector<1x16xf32>
    %141 = vector.broadcast %139 : vector<16x1xf32> to vector<16x16xf32>
    %142 = vector.broadcast %140 : vector<1x16xf32> to vector<16x16xf32>
    %143 = arith.addf %141, %142 : vector<16x16xf32>
    %cst_48 = arith.constant 0.000000e+00 : f32
    %144 = vector.broadcast %cst_48 : f32 to vector<16x16xf32>
    %145 = arith.cmpf ogt, %143, %144 : vector<16x16xf32>
    %cst_49 = arith.constant 2.000000e-01 : f32
    %146 = vector.broadcast %cst_49 : f32 to vector<16x16xf32>
    %147 = arith.mulf %146, %143 : vector<16x16xf32>
    %148 = arith.select %145, %143, %147 : vector<16x16xi1>, vector<16x16xf32>
    %cst_50 = arith.constant 0.000000e+00 : f32
    %149 = vector.broadcast %cst_50 : f32 to vector<16x16xf32>
    %150 = arith.cmpf ogt, %1, %149 : vector<16x16xf32>
    %cst_51 = arith.constant -1.000000e+30 : f32
    %151 = vector.broadcast %cst_51 : f32 to vector<16x16xf32>
    %152 = arith.select %150, %148, %151 : vector<16x16xi1>, vector<16x16xf32>
    %cst_52 = arith.constant dense<0xFF800000> : vector<16xf32>
    %153 = vector.multi_reduction <maximumf>, %152, %cst_52 [1] : vector<16x16xf32> to vector<16xf32>
    %154 = vector.shape_cast %153 : vector<16xf32> to vector<16x1xf32>
    %155 = vector.broadcast %154 : vector<16x1xf32> to vector<16x16xf32>
    %156 = arith.subf %152, %155 : vector<16x16xf32>
    %157 = math.exp %156 : vector<16x16xf32>
    %cst_53 = arith.constant dense<0.000000e+00> : vector<16xf32>
    %158 = vector.multi_reduction <add>, %157, %cst_53 [1] : vector<16x16xf32> to vector<16xf32>
    %159 = vector.shape_cast %158 : vector<16xf32> to vector<16x1xf32>
    %160 = vector.extract_strided_slice %6 {offsets = [0, 160], sizes = [16, 32], strides = [1, 1]} : vector<16x256xf32> to vector<16x32xf32>
    %cst_54 = arith.constant dense<0.000000e+00> : vector<16x32xf32>
    %161 = tpu.matmul %157, %160, %cst_54 {dimension_numbers = #tpu.dot_dimension_numbers<[1], [0], [0], [1], [0, 0, 1, 1], [], []>} : vector<16x16xf32>, vector<16x32xf32>, vector<16x32xf32> -> vector<16x32xf32>
    %162 = tpu.reciprocal %159 {approx = true} : vector<16x1xf32> -> vector<16x1xf32>
    %163 = vector.broadcast %162 : vector<16x1xf32> to vector<16x32xf32>
    %164 = arith.mulf %161, %163 : vector<16x32xf32>
    %165 = vector.extract_strided_slice %7 {offsets = [0, 6], sizes = [16, 1], strides = [1, 1]} : vector<16x8xf32> to vector<16x1xf32>
    %166 = vector.extract_strided_slice %8 {offsets = [6, 0], sizes = [1, 16], strides = [1, 1]} : vector<8x16xf32> to vector<1x16xf32>
    %167 = vector.broadcast %165 : vector<16x1xf32> to vector<16x16xf32>
    %168 = vector.broadcast %166 : vector<1x16xf32> to vector<16x16xf32>
    %169 = arith.addf %167, %168 : vector<16x16xf32>
    %cst_55 = arith.constant 0.000000e+00 : f32
    %170 = vector.broadcast %cst_55 : f32 to vector<16x16xf32>
    %171 = arith.cmpf ogt, %169, %170 : vector<16x16xf32>
    %cst_56 = arith.constant 2.000000e-01 : f32
    %172 = vector.broadcast %cst_56 : f32 to vector<16x16xf32>
    %173 = arith.mulf %172, %169 : vector<16x16xf32>
    %174 = arith.select %171, %169, %173 : vector<16x16xi1>, vector<16x16xf32>
    %cst_57 = arith.constant 0.000000e+00 : f32
    %175 = vector.broadcast %cst_57 : f32 to vector<16x16xf32>
    %176 = arith.cmpf ogt, %1, %175 : vector<16x16xf32>
    %cst_58 = arith.constant -1.000000e+30 : f32
    %177 = vector.broadcast %cst_58 : f32 to vector<16x16xf32>
    %178 = arith.select %176, %174, %177 : vector<16x16xi1>, vector<16x16xf32>
    %cst_59 = arith.constant dense<0xFF800000> : vector<16xf32>
    %179 = vector.multi_reduction <maximumf>, %178, %cst_59 [1] : vector<16x16xf32> to vector<16xf32>
    %180 = vector.shape_cast %179 : vector<16xf32> to vector<16x1xf32>
    %181 = vector.broadcast %180 : vector<16x1xf32> to vector<16x16xf32>
    %182 = arith.subf %178, %181 : vector<16x16xf32>
    %183 = math.exp %182 : vector<16x16xf32>
    %cst_60 = arith.constant dense<0.000000e+00> : vector<16xf32>
    %184 = vector.multi_reduction <add>, %183, %cst_60 [1] : vector<16x16xf32> to vector<16xf32>
    %185 = vector.shape_cast %184 : vector<16xf32> to vector<16x1xf32>
    %186 = vector.extract_strided_slice %6 {offsets = [0, 192], sizes = [16, 32], strides = [1, 1]} : vector<16x256xf32> to vector<16x32xf32>
    %cst_61 = arith.constant dense<0.000000e+00> : vector<16x32xf32>
    %187 = tpu.matmul %183, %186, %cst_61 {dimension_numbers = #tpu.dot_dimension_numbers<[1], [0], [0], [1], [0, 0, 1, 1], [], []>} : vector<16x16xf32>, vector<16x32xf32>, vector<16x32xf32> -> vector<16x32xf32>
    %188 = tpu.reciprocal %185 {approx = true} : vector<16x1xf32> -> vector<16x1xf32>
    %189 = vector.broadcast %188 : vector<16x1xf32> to vector<16x32xf32>
    %190 = arith.mulf %187, %189 : vector<16x32xf32>
    %191 = vector.extract_strided_slice %7 {offsets = [0, 7], sizes = [16, 1], strides = [1, 1]} : vector<16x8xf32> to vector<16x1xf32>
    %192 = vector.extract_strided_slice %8 {offsets = [7, 0], sizes = [1, 16], strides = [1, 1]} : vector<8x16xf32> to vector<1x16xf32>
    %193 = vector.broadcast %191 : vector<16x1xf32> to vector<16x16xf32>
    %194 = vector.broadcast %192 : vector<1x16xf32> to vector<16x16xf32>
    %195 = arith.addf %193, %194 : vector<16x16xf32>
    %cst_62 = arith.constant 0.000000e+00 : f32
    %196 = vector.broadcast %cst_62 : f32 to vector<16x16xf32>
    %197 = arith.cmpf ogt, %195, %196 : vector<16x16xf32>
    %cst_63 = arith.constant 2.000000e-01 : f32
    %198 = vector.broadcast %cst_63 : f32 to vector<16x16xf32>
    %199 = arith.mulf %198, %195 : vector<16x16xf32>
    %200 = arith.select %197, %195, %199 : vector<16x16xi1>, vector<16x16xf32>
    %cst_64 = arith.constant 0.000000e+00 : f32
    %201 = vector.broadcast %cst_64 : f32 to vector<16x16xf32>
    %202 = arith.cmpf ogt, %1, %201 : vector<16x16xf32>
    %cst_65 = arith.constant -1.000000e+30 : f32
    %203 = vector.broadcast %cst_65 : f32 to vector<16x16xf32>
    %204 = arith.select %202, %200, %203 : vector<16x16xi1>, vector<16x16xf32>
    %cst_66 = arith.constant dense<0xFF800000> : vector<16xf32>
    %205 = vector.multi_reduction <maximumf>, %204, %cst_66 [1] : vector<16x16xf32> to vector<16xf32>
    %206 = vector.shape_cast %205 : vector<16xf32> to vector<16x1xf32>
    %207 = vector.broadcast %206 : vector<16x1xf32> to vector<16x16xf32>
    %208 = arith.subf %204, %207 : vector<16x16xf32>
    %209 = math.exp %208 : vector<16x16xf32>
    %cst_67 = arith.constant dense<0.000000e+00> : vector<16xf32>
    %210 = vector.multi_reduction <add>, %209, %cst_67 [1] : vector<16x16xf32> to vector<16xf32>
    %211 = vector.shape_cast %210 : vector<16xf32> to vector<16x1xf32>
    %212 = vector.extract_strided_slice %6 {offsets = [0, 224], sizes = [16, 32], strides = [1, 1]} : vector<16x256xf32> to vector<16x32xf32>
    %cst_68 = arith.constant dense<0.000000e+00> : vector<16x32xf32>
    %213 = tpu.matmul %209, %212, %cst_68 {dimension_numbers = #tpu.dot_dimension_numbers<[1], [0], [0], [1], [0, 0, 1, 1], [], []>} : vector<16x16xf32>, vector<16x32xf32>, vector<16x32xf32> -> vector<16x32xf32>
    %214 = tpu.reciprocal %211 {approx = true} : vector<16x1xf32> -> vector<16x1xf32>
    %215 = vector.broadcast %214 : vector<16x1xf32> to vector<16x32xf32>
    %216 = arith.mulf %213, %215 : vector<16x32xf32>
    %217 = tpu.concatenate %34, %60, %86, %112, %138, %164, %190, %216 in 1 : vector<16x32xf32>, vector<16x32xf32>, vector<16x32xf32>, vector<16x32xf32>, vector<16x32xf32>, vector<16x32xf32>, vector<16x32xf32>, vector<16x32xf32> -> vector<16x256xf32>
    %218 = vector.broadcast %5 : vector<1x256xf32> to vector<16x256xf32>
    %219 = arith.addf %217, %218 : vector<16x256xf32>
    %cst_69 = arith.constant 0.000000e+00 : f32
    %220 = vector.broadcast %cst_69 : f32 to vector<16x256xf32>
    %221 = arith.maximumf %219, %220 : vector<16x256xf32>
    %c0_70 = arith.constant 0 : index
    %c0_71 = arith.constant 0 : index
    %222 = vector.load %arg7[%c0_70, %c0_71] : memref<256x32xf32, #tpu.memory_space<vmem>>, vector<256x32xf32>
    %c0_72 = arith.constant 0 : index
    %c0_73 = arith.constant 0 : index
    %223 = vector.load %arg8[%c0_72, %c0_73] : memref<256x1xf32, #tpu.memory_space<vmem>>, vector<256x1xf32>
    %c0_74 = arith.constant 0 : index
    %c0_75 = arith.constant 0 : index
    %224 = vector.load %arg9[%c0_74, %c0_75] : memref<256x1xf32, #tpu.memory_space<vmem>>, vector<256x1xf32>
    %c0_76 = arith.constant 0 : index
    %c0_77 = arith.constant 0 : index
    %225 = vector.load %arg10[%c0_76, %c0_77] : memref<1x32xf32, #tpu.memory_space<vmem>>, vector<1x32xf32>
    %cst_78 = arith.constant dense<0.000000e+00> : vector<16x32xf32>
    %226 = tpu.matmul %221, %222, %cst_78 {dimension_numbers = #tpu.dot_dimension_numbers<[1], [0], [0], [1], [0, 0, 1, 1], [], []>} : vector<16x256xf32>, vector<256x32xf32>, vector<16x32xf32> -> vector<16x32xf32>
    %cst_79 = arith.constant dense<0.000000e+00> : vector<16x1xf32>
    %227 = tpu.matmul %221, %224, %cst_79 {dimension_numbers = #tpu.dot_dimension_numbers<[1], [0], [0], [1], [0, 0, 1, 1], [], []>} : vector<16x256xf32>, vector<256x1xf32>, vector<16x1xf32> -> vector<16x1xf32>
    %cst_80 = arith.constant dense<0.000000e+00> : vector<1x16xf32>
    %228 = tpu.matmul %223, %221, %cst_80 {dimension_numbers = #tpu.dot_dimension_numbers<[0], [1], [1], [0], [0, 1, 1, 0], [], []>} : vector<256x1xf32>, vector<16x256xf32>, vector<1x16xf32> -> vector<1x16xf32>
    %229 = vector.broadcast %227 : vector<16x1xf32> to vector<16x16xf32>
    %230 = vector.broadcast %228 : vector<1x16xf32> to vector<16x16xf32>
    %231 = arith.addf %229, %230 : vector<16x16xf32>
    %cst_81 = arith.constant 0.000000e+00 : f32
    %232 = vector.broadcast %cst_81 : f32 to vector<16x16xf32>
    %233 = arith.cmpf ogt, %231, %232 : vector<16x16xf32>
    %cst_82 = arith.constant 2.000000e-01 : f32
    %234 = vector.broadcast %cst_82 : f32 to vector<16x16xf32>
    %235 = arith.mulf %234, %231 : vector<16x16xf32>
    %236 = arith.select %233, %231, %235 : vector<16x16xi1>, vector<16x16xf32>
    %cst_83 = arith.constant 0.000000e+00 : f32
    %237 = vector.broadcast %cst_83 : f32 to vector<16x16xf32>
    %238 = arith.cmpf ogt, %1, %237 : vector<16x16xf32>
    %cst_84 = arith.constant -1.000000e+30 : f32
    %239 = vector.broadcast %cst_84 : f32 to vector<16x16xf32>
    %240 = arith.select %238, %236, %239 : vector<16x16xi1>, vector<16x16xf32>
    %cst_85 = arith.constant dense<0xFF800000> : vector<16xf32>
    %241 = vector.multi_reduction <maximumf>, %240, %cst_85 [1] : vector<16x16xf32> to vector<16xf32>
    %242 = vector.shape_cast %241 : vector<16xf32> to vector<16x1xf32>
    %243 = vector.broadcast %242 : vector<16x1xf32> to vector<16x16xf32>
    %244 = arith.subf %240, %243 : vector<16x16xf32>
    %245 = math.exp %244 : vector<16x16xf32>
    %cst_86 = arith.constant dense<0.000000e+00> : vector<16xf32>
    %246 = vector.multi_reduction <add>, %245, %cst_86 [1] : vector<16x16xf32> to vector<16xf32>
    %247 = vector.shape_cast %246 : vector<16xf32> to vector<16x1xf32>
    %cst_87 = arith.constant dense<0.000000e+00> : vector<16x32xf32>
    %248 = tpu.matmul %245, %226, %cst_87 {dimension_numbers = #tpu.dot_dimension_numbers<[1], [0], [0], [1], [0, 0, 1, 1], [], []>} : vector<16x16xf32>, vector<16x32xf32>, vector<16x32xf32> -> vector<16x32xf32>
    %249 = tpu.reciprocal %247 {approx = true} : vector<16x1xf32> -> vector<16x1xf32>
    %250 = vector.broadcast %249 : vector<16x1xf32> to vector<16x32xf32>
    %251 = arith.mulf %248, %250 : vector<16x32xf32>
    %252 = vector.broadcast %225 : vector<1x32xf32> to vector<16x32xf32>
    %253 = arith.addf %251, %252 : vector<16x32xf32>
    %cst_88 = arith.constant 0.000000e+00 : f32
    %254 = vector.broadcast %cst_88 : f32 to vector<16x32xf32>
    %255 = arith.maximumf %253, %254 : vector<16x32xf32>
    %c0_89 = arith.constant 0 : index
    %c0_90 = arith.constant 0 : index
    %256 = vector.load %arg2[%c0_89, %c0_90] : memref<2x16xf32, #tpu.memory_space<vmem>>, vector<2x16xf32>
    %cst_91 = arith.constant dense<0.000000e+00> : vector<2x32xf32>
    %257 = tpu.matmul %256, %255, %cst_91 {dimension_numbers = #tpu.dot_dimension_numbers<[1], [0], [0], [1], [0, 0, 1, 1], [], []>} : vector<2x16xf32>, vector<16x32xf32>, vector<2x32xf32> -> vector<2x32xf32>
    %c0_92 = arith.constant 0 : index
    %c0_93 = arith.constant 0 : index
    %258 = vector.load %arg11[%c0_92, %c0_93] : memref<32x4xf32, #tpu.memory_space<vmem>>, vector<32x4xf32>
    %cst_94 = arith.constant dense<0.000000e+00> : vector<2x4xf32>
    %259 = tpu.matmul %257, %258, %cst_94 {dimension_numbers = #tpu.dot_dimension_numbers<[1], [0], [0], [1], [0, 0, 1, 1], [], []>} : vector<2x32xf32>, vector<32x4xf32>, vector<2x4xf32> -> vector<2x4xf32>
    %c0_95 = arith.constant 0 : index
    %c0_96 = arith.constant 0 : index
    %260 = vector.load %arg12[%c0_95, %c0_96] : memref<1x4xf32, #tpu.memory_space<vmem>>, vector<1x4xf32>
    %261 = vector.broadcast %260 : vector<1x4xf32> to vector<2x4xf32>
    %262 = arith.addf %259, %261 : vector<2x4xf32>
    %cst_97 = arith.constant dense<0xFF800000> : vector<2xf32>
    %263 = vector.multi_reduction <maximumf>, %262, %cst_97 [1] : vector<2x4xf32> to vector<2xf32>
    %264 = vector.shape_cast %263 : vector<2xf32> to vector<2x1xf32>
    %265 = vector.broadcast %264 : vector<2x1xf32> to vector<2x4xf32>
    %266 = arith.subf %262, %265 : vector<2x4xf32>
    %267 = math.exp %266 : vector<2x4xf32>
    %cst_98 = arith.constant dense<0.000000e+00> : vector<2xf32>
    %268 = vector.multi_reduction <add>, %267, %cst_98 [1] : vector<2x4xf32> to vector<2xf32>
    %269 = vector.shape_cast %268 : vector<2xf32> to vector<2x1xf32>
    %270 = math.log %269 : vector<2x1xf32>
    %271 = vector.broadcast %270 : vector<2x1xf32> to vector<2x4xf32>
    %272 = arith.subf %266, %271 : vector<2x4xf32>
    %c0_99 = arith.constant 0 : index
    %c0_100 = arith.constant 0 : index
    %273 = vector.load %arg13[%c0_99, %c0_100] : memref<2x4xf32, #tpu.memory_space<vmem>>, vector<2x4xf32>
    tpu.vector_store %arg13[%c0_99, %c0_100], %272 {strides = array<i32>} : memref<2x4xf32, #tpu.memory_space<vmem>>, vector<2x4xf32>,
    return
  }
}

</mosaic_0001>

<bundles_post_ra>
// kernel: propose_t_forward.1
= control target key start
LH: loop header
LB: loop body
LE: loop exit
PB: predicated region body
PF: predicated region fallthrough
CT: control target
= control target key end

     0   :  { %vm54_vm0 = vcmask 64512   ;;  %s3484_s0 = inlined_call_operand.vmem [shape: f32[16,8], index: 0, kind: input, shape index: {}]   ;;  %s3485_s1 = inlined_call_operand.vmem [shape: f32[16,16], index: 1, kind: input, shape index: {}]   ;;  %s3486_s2 = inlined_call_operand.vmem [shape: f32[2,16], index: 2, kind: input, shape index: {}]   ;;  %s3487_s3 = inlined_call_operand.vmem [shape: f32[8,256], index: 3, kind: input, shape index: {}]   ;;  %s3488_s4 = inlined_call_operand.vmem [shape: f32[8,8], index: 4, kind: input, shape index: {}]   ;;  %s3489_s5 = inlined_call_operand.vmem [shape: f32[8,8], index: 5, kind: input, shape index: {}]   ;;  %s3490_s6 = inlined_call_operand.vmem [shape: f32[1,256], index: 6, kind: input, shape index: {}]   ;;  %s3491_s7 = inlined_call_operand.vmem [shape: f32[256,32], index: 7, kind: input, shape index: {}]   ;;  %s3492_s8 = inlined_call_operand.vmem [shape: f32[256,1], index: 8, kind: input, shape index: {}]   ;;  %s3493_s9 = inlined_call_operand.vmem [shape: f32[256,1], index: 9, kind: input, shape index: {}]   ;;  %s3494_s10 = inlined_call_operand.vmem [shape: f32[1,32], index: 10, kind: input, shape index: {}]   ;;  %s3495_s11 = inlined_call_operand.vmem [shape: f32[32,4], index: 11, kind: input, shape index: {}]   ;;  %s3496_s12 = inlined_call_operand.vmem [shape: f32[1,4], index: 12, kind: input, shape index: {}]   ;;  %s3497_s13 = inlined_call_operand.hbm [shape: f32[2,4], index: 13, kind: output, shape index: {}]  }
   0x1   :  { %v52_v0 = vld [vmem:[%s3489_s5] sm:$0xff]  ;;  %v46_v3 = vld [vmem:[%s3484_s0 + $0x8] sm:$0xff] }
   0x2   :  { %v51_v1 = vld [vmem:[%s3488_s4] sm:$0xff]  ;;  %2304 = vmatprep.subr.mxu1 %v52_v0  ;;  %v50_v4 = vld [vmem:[%s3487_s3 + $0x8] sm:$0xff] }
   0x3   :  { %v45_v2 = vld [vmem:[%s3484_s0] sm:$0xff]  ;;  %213 = vxpose.xlu0.b32.start.end [1/1] (short) (narrow) %v51_v1, 8  ;;  %2305 = vmatpush3.msra.mxu1 %v52_v0 }
   0x4   :  { %v49_v5 = vld [vmem:[%s3487_s3] sm:$0xff]  ;;  %2306 = vmatprep.mubr.msk.f32.mxu1 %vm54_vm0, %v45_v2  ;;  %61 = vmatprep.subr.mxu0 %v50_v4 }
   0x5   :  { %2307 = vmatmul.mubr.msk.f32.vlgmr.msra.gmra.mrb[0].mxu1 %vm54_vm0, %v46_v3 }
   0x6   :  { %18 = vsyncpa [#allocation3], 0  ;;  %62 = vmatpush1.msra.mxu0 %v49_v5  ;;  %v2713_v6 = vmov 0.0   ;;  %v2714_v7 = vmov 0.0|0.0   ;;  %v2715_v8 = vmov 0   ;;  %v2398_v9 = vpack.c.bf16 %v46_v3, %v45_v2  ;;  %s2720_s0 = smov 96  }
   0x7   :  { %125 = vmatprep.mubr.f32.mxu0 %v2713_v6  ;;  %2397 = vmatprep.subr.bf16.mxu0 %v2714_v7  ;;  %vm2399_vm1 = vmpackc.low %vm54_vm0, %vm54_vm0  ;;  %vm2716_vm2 = vmmov 0   ;;  %v2717_v15 = vmov 1   ;;  %v2718_v16 = vmov 6   ;;  %v2719_v23 = vmov 2   ;;  %s2725_s3 = smov 64   ;;  %s2726_s4 = smov 32  }
   0x8   :  { %2149 = vmatmul.mubr.msk.f32.vlgmr.msra.gmra.mrb[0].mxu0 %vm54_vm0, %v45_v2  ;;  %2530 = vset.pattern.permute.xlu1 %v2715_v8  ;;  %v2721_v24 = vmov 3   ;;  %v2722_v25 = vmov 4   ;;  %v2723_v26 = vmov 5   ;;  %v2724_v27 = vmov 7   ;;  %v2853_v37 = vld [vmem:[%s3485_s1 + $0x8] sm:$0xff]  ;;  %v2873_v50 = vld [vmem:[%s3485_s1] sm:$0xff] }
   0x9   :  { %131 = vmatprep.mubr.f32.mxu0 %v2713_v6  ;;  %v328_v28 = vlaneseq  ;;  %vm341_vm4 = vcmp.gt.f32.partialorder %v2853_v37, 0.0  ;;  %vm344_vm5 = vcmask 130048   ;;  %vm340_vm8 = vcmp.gt.f32.partialorder %v2873_v50, 0.0 }
   0xb   :  { %v2840_v29 = vshrl.u32 %v328_v28, 7 }
   0xc   :  { %2150 = vmatmul.mubr.msk.f32.gmra.mrb[2].mxu0 %vm54_vm0, %v46_v3 }
   0xd   :  { %2313 = vmatprep.mubr.msk.f32.mxu0 %vm2716_vm2, %v2713_v6  ;;  %2400 = vmatpush3.bf16.xpose.msk.msra.mxu0 %vm2399_vm1, %v2398_v9  ;;  %v2843_v30 = vsub.s32 0, %v2840_v29  ;;  %v458_v31 = vsub.s32 1, %v2840_v29  ;;  %v591_v41 = vsub.s32 2, %v2840_v29  ;;  %v722_v53 = vsub.s32 3, %v2840_v29 }
   0xe   :  { %v853_v2 = vsub.s32 4, %v2840_v29  ;;  %v1111_v3 = vsub.s32 6, %v2840_v29 }
  0x2c   :  { %2529 = vset.pattern.permute.xlu0 %v2715_v8 }
  0x83   :  { %v229_v10 = vpop.trf.xlu0 }
  0x84   :  { %2314 = vmatmul.mubr.msk.f32.vlgmr.msra.gmra.mrb[4].mxu0 %vm54_vm0, %v229_v10 }
  0xd8   :  { %v2308_v11 = vpop.f32.mrb[0].mxu1 }
  0xd9   :  { %325 = vperm.xlu1 %2530, %v2308_v11   ;;  %v204_v12 = vpop.f32.mrb[1].mxu1 }
  0xda   :  { %320 = vperm.xlu0 %2529, %v204_v12  }
  0xdb   :  { %v127_v13 = vpop.f32.mrb[0].mxu0 }
  0xdc   :  { %v129_v14 = vpop.f32.mrb[1].mxu0 }
  0xdd   :  { %2531 = vset.pattern.permute.xlu1 %v2717_v15 }
  0xde   :  { %453 = vperm.xlu1 %2531, %v2308_v11   ;;  %2536 = vset.pattern.permute.xlu0 %v2718_v16 }
  0xdf   :  { %v133_v17 = vpop.f32.mrb[2].mxu0  ;;  %1106 = vperm.xlu0 %2536, %v2308_v11  }
  0xe0   :  { %v2549_v18 = vpack.i.bf16 %v133_v17, %v127_v13  ;;  %v135_v19 = vpop.f32.mrb[3].mxu0  ;;  %v2401_v20 = vpack.c.bf16 %v133_v17, %v127_v13  ;;  %v978_v17 = vsub.s32 5, %v2840_v29 }
  0xe1   :  { %v2830_v21 = vpack.i.bf16 %v135_v19, %v129_v14  ;;  %v2832_v22 = vpack.c.bf16 %v135_v19, %v129_v14 }
  0xe2   :  { %2402 = vmatprep.subr.bf16.mxu1 %v2401_v20  ;;  %2532 = vset.pattern.permute.xlu1 %v2719_v23 }
  0xe3   :  { %2404 = vmatpush3.bf16.msra.mxu1 %v2401_v20  ;;  %586 = vperm.xlu1 %2532, %v2308_v11  }
  0xe4   :  { %2545 = vrot.lane.b32.xlu0 %v2549_v18, %s2720_s0 }
  0xe7   :  { %2533 = vset.pattern.permute.xlu1 %v2721_v24 }
  0xe8   :  { %717 = vperm.xlu1 %2533, %v2308_v11  }
  0xec   :  { %2534 = vset.pattern.permute.xlu1 %v2722_v25 }
  0xed   :  { %848 = vperm.xlu1 %2534, %v2308_v11  }
  0xf1   :  { %2535 = vset.pattern.permute.xlu1 %v2723_v26 }
  0xf2   :  { %973 = vperm.xlu1 %2535, %v2308_v11  }
  0xf6   :  { %2537 = vset.pattern.permute.xlu1 %v2717_v15 }
  0xf7   :  { %449 = vperm.xlu1 %2537, %v204_v12  }
  0xfb   :  { %2538 = vset.pattern.permute.xlu1 %v2719_v23 }
  0xfc   :  { %582 = vperm.xlu1 %2538, %v204_v12  }
 0x100   :  { %2539 = vset.pattern.permute.xlu1 %v2721_v24 }
 0x101   :  { %713 = vperm.xlu1 %2539, %v204_v12  }
 0x105   :  { %2540 = vset.pattern.permute.xlu1 %v2722_v25 }
 0x106   :  { %844 = vperm.xlu1 %2540, %v204_v12  }
 0x10a   :  { %2541 = vset.pattern.permute.xlu1 %v2723_v26 }
 0x10b   :  { %969 = vperm.xlu1 %2541, %v204_v12  }
 0x10f   :  { %2542 = vset.pattern.permute.xlu1 %v2718_v16 }
 0x110   :  { %1102 = vperm.xlu1 %2542, %v204_v12  }
 0x114   :  { %2543 = vset.pattern.permute.xlu1 %v2724_v27 }
 0x115   :  { %1233 = vperm.xlu1 %2543, %v204_v12  }
 0x119   :  { %1237 = vperm.xlu1 %2543, %v2308_v11  }
 0x11d   :  { %2550 = vrot.lane.b32.xlu1 %v2549_v18, %s2725_s3 }
 0x11e   :  { %2611 = vset.pattern.permute.xlu1 %v2715_v8 }
 0x121   :  { %2555 = vrot.lane.b32.xlu1 %v2549_v18, %s2726_s4 }
 0x125   :  { %2560 = vrot.lane.b32.xlu1 %v2830_v21, %s2720_s0 }
 0x157   :  { %v2846_v32 = vpop.f32.mrb[4].mxu0 }
 0x158   :  { %v326_v33 = vpop.permute.xlu1 %325  ;;  %v331_v34 = vrot.slane %v2846_v32, %v2843_v30  ;;  %v2315_v35 = vpop.f32.mrb[5].mxu0  ;;  %v2858_v40 = vrot.slane %v2846_v32, %v458_v31  ;;  %v2868_v49 = vrot.slane %v2846_v32, %v591_v41  ;;  %v2887_v62 = vrot.slane %v2846_v32, %v722_v53 }
 0x159   :  { %v321_v36 = vpop.permute.xlu0 %320  ;;  %v854_v14 = vrot.slane %v2846_v32, %v853_v2  ;;  %v2909_v15 = vrot.slane %v2846_v32, %v1111_v3  ;;  %v979_v26 = vrot.slane %v2846_v32, %v978_v17 }
 0x15a   :  { %v333_v38 = vadd.f32 %v331_v34, %v326_v33  ;;  %v332_v39 = vadd.f32 %v331_v34, %v321_v36 }
 0x15c   :  { %v337_v42 = vmul.f32 0.2, %v333_v38  ;;  %vm335_vm3 = vcmp.gt.f32.partialorder %v333_v38, 0.0  ;;  %v336_v44 = vmul.f32 0.2, %v332_v39  ;;  %vm334_vm6 = vcmp.gt.f32.partialorder %v332_v39, 0.0 }
 0x15d   :  { %v454_v43 = vpop.permute.xlu1 %453 }
 0x15e   :  { %v461_v45 = vadd.f32 %v2858_v40, %v454_v43  ;;  %v1107_v46 = vpop.permute.xlu0 %1106  ;;  %v339_v47 = vsel %vm335_vm3, %v333_v38, %v337_v42  ;;  %v338_v56 = vsel %vm334_vm6, %v332_v39, %v336_v44 }
 0x15f   :  { %v2865_v48 = vsel %vm341_vm4, %v339_v47, -1e+30  ;;  %v2891_v1 = vsel %vm340_vm8, %v338_v56, -1e+30  ;;  %v1114_v24 = vadd.f32 %v2909_v15, %v1107_v46 }
 0x160   :  { %v465_v51 = vmul.f32 0.2, %v461_v45  ;;  %v348_v52 = vsel %vm344_vm5, %v2865_v48, -inf  ;;  %vm463_vm7 = vcmp.gt.f32.partialorder %v461_v45, 0.0  ;;  %v345_v11 = vsel %vm344_vm5, %v2891_v1, -inf }
 0x161   :  { %349 = vmax.xlane.f32.xlu1 %v348_v52  ;;  %v1118_v34 = vmul.f32 0.2, %v1114_v24  ;;  %vm1116_vm12 = vcmp.gt.f32.partialorder %v1114_v24, 0.0 }
 0x162   :  { %v587_v54 = vpop.permute.xlu1 %586  ;;  %v467_v55 = vsel %vm463_vm7, %v461_v45, %v465_v51  ;;  %v2546_v57 = vpop.permute.xlu0 %2545 }
 0x163   :  { %v594_v58 = vadd.f32 %v2868_v49, %v587_v54  ;;  %v2882_v59 = vsel %vm341_vm4, %v467_v55, -1e+30  ;;  %v2548_v60 = vunpack.i.h.bf16 %v2546_v57  ;;  %v2547_v63 = vunpack.i.l.bf16 %v2546_v57 }
 0x164   :  { %v473_v61 = vsel %vm344_vm5, %v2882_v59, -inf  ;;  %v1120_v43 = vsel %vm1116_vm12, %v1114_v24, %v1118_v34  ;;  %v1242_v24 = vsub.s32 7, %v2840_v29  ;;  %vm1414_vm12 = vcmask 523264  }
 0x165   :  { %v598_v0 = vmul.f32 0.2, %v594_v58  ;;  %474 = vmax.xlane.f32.xlu0 %v473_v61  ;;  %vm596_vm9 = vcmp.gt.f32.partialorder %v594_v58, 0.0  ;;  %v2895_v4 = vpack.c.bf16 %v2548_v60, %v2547_v63  ;;  %v2935_v51 = vsel %vm341_vm4, %v1120_v43, -1e+30 }
 0x167   :  { %v718_v5 = vpop.permute.xlu1 %717  ;;  %v600_v9 = vsel %vm596_vm9, %v594_v58, %v598_v0  ;;  %2406 = vmatprep.subr.bf16.mxu1 %v2895_v4 }
 0x168   :  { %v725_v10 = vadd.f32 %v2887_v62, %v718_v5  ;;  %v2902_v12 = vsel %vm341_vm4, %v600_v9, -1e+30 }
 0x169   :  { %346 = vmax.xlane.f32.xlu0 %v345_v11  ;;  %v606_v13 = vsel %vm344_vm5, %v2902_v12, -inf }
 0x16a   :  { %v729_v16 = vmul.f32 0.2, %v725_v10  ;;  %607 = vmax.xlane.f32.xlu1 %v606_v13  ;;  %vm727_vm10 = vcmp.gt.f32.partialorder %v725_v10, 0.0 }
 0x16c   :  { %v849_v18 = vpop.permute.xlu1 %848  ;;  %v731_v19 = vsel %vm727_vm10, %v725_v10, %v729_v16  ;;  %vm1411_vm10 = vcmask 261120  }
 0x16d   :  { %v856_v20 = vadd.f32 %v854_v14, %v849_v18  ;;  %v2914_v23 = vsel %vm341_vm4, %v731_v19, -1e+30 }
 0x16e   :  { %v737_v25 = vsel %vm344_vm5, %v2914_v23, -inf }
 0x16f   :  { %v860_v27 = vmul.f32 0.2, %v856_v20  ;;  %738 = vmax.xlane.f32.xlu1 %v737_v25  ;;  %vm858_vm11 = vcmp.gt.f32.partialorder %v856_v20, 0.0 }
 0x171   :  { %v974_v28 = vpop.permute.xlu1 %973  ;;  %v862_v33 = vsel %vm858_vm11, %v856_v20, %v860_v27  ;;  %vm1417_vm11 = vcmask 785408  }
 0x172   :  { %v981_v35 = vadd.f32 %v979_v26, %v974_v28  ;;  %v2922_v36 = vsel %vm341_vm4, %v862_v33, -1e+30  ;;  %v1243_v33 = vrot.slane %v2846_v32, %v1242_v24 }
 0x173   :  { %v868_v38 = vsel %vm344_vm5, %v2922_v36, -inf }
 0x174   :  { %v985_v39 = vmul.f32 0.2, %v981_v35  ;;  %869 = vmax.xlane.f32.xlu1 %v868_v38  ;;  %vm983_vm13 = vcmp.gt.f32.partialorder %v981_v35, 0.0 }
 0x176   :  { %v450_v41 = vpop.permute.xlu1 %449  ;;  %v987_v42 = vsel %vm983_vm13, %v981_v35, %v985_v39 }
 0x177   :  { %v460_v44 = vadd.f32 %v2858_v40, %v450_v41  ;;  %v2929_v45 = vsel %vm341_vm4, %v987_v42, -1e+30  ;;  %v1126_v40 = vsel %vm344_vm5, %v2935_v51, -inf }
 0x178   :  { %v993_v46 = vsel %vm344_vm5, %v2929_v45, -inf }
 0x179   :  { %v464_v47 = vmul.f32 0.2, %v460_v44  ;;  %994 = vmax.xlane.f32.xlu1 %v993_v46  ;;  %vm462_vm14 = vcmp.gt.f32.partialorder %v460_v44, 0.0 }
 0x17b   :  { %v583_v52 = vpop.permute.xlu1 %582  ;;  %v466_v53 = vsel %vm462_vm14, %v460_v44, %v464_v47 }
 0x17c   :  { %v593_v54 = vadd.f32 %v2868_v49, %v583_v52  ;;  %v2942_v55 = vsel %vm340_vm8, %v466_v53, -1e+30 }
 0x17d   :  { %1127 = vmax.xlane.f32.xlu1 %v1126_v40  ;;  %v470_v56 = vsel %vm344_vm5, %v2942_v55, -inf }
 0x17e   :  { %v597_v57 = vmul.f32 0.2, %v593_v54  ;;  %471 = vmax.xlane.f32.xlu0 %v470_v56  ;;  %vm595_vm15 = vcmp.gt.f32.partialorder %v593_v54, 0.0 }
 0x180   :  { %v714_v58 = vpop.permute.xlu1 %713  ;;  %v599_v60 = vsel %vm595_vm15, %v593_v54, %v597_v57 }
 0x181   :  { %v724_v61 = vadd.f32 %v2887_v62, %v714_v58  ;;  %v2949_v49 = vsel %vm340_vm8, %v599_v60, -1e+30 }
 0x182   :  { %v603_v63 = vsel %vm344_vm5, %v2949_v49, -inf }
 0x183   :  { %v728_v0 = vmul.f32 0.2, %v724_v61  ;;  %604 = vmax.xlane.f32.xlu0 %v603_v63  ;;  %vm726_vm0 = vcmp.gt.f32.partialorder %v724_v61, 0.0 }
 0x185   :  { %v845_v2 = vpop.permute.xlu1 %844  ;;  %v730_v3 = vsel %vm726_vm0, %v724_v61, %v728_v0 }
 0x186   :  { %v855_v5 = vadd.f32 %v854_v14, %v845_v2  ;;  %v2955_v9 = vsel %vm340_vm8, %v730_v3, -1e+30 }
 0x187   :  { %v734_v62 = vsel %vm344_vm5, %v2955_v9, -inf }
 0x188   :  { %v859_v10 = vmul.f32 0.2, %v855_v5  ;;  %735 = vmax.xlane.f32.xlu0 %v734_v62  ;;  %vm857_vm1 = vcmp.gt.f32.partialorder %v855_v5, 0.0 }
 0x18a   :  { %v970_v11 = vpop.permute.xlu1 %969  ;;  %v861_v13 = vsel %vm857_vm1, %v855_v5, %v859_v10 }
 0x18b   :  { %v980_v16 = vadd.f32 %v979_v26, %v970_v11  ;;  %v2961_v17 = vsel %vm340_vm8, %v861_v13, -1e+30 }
 0x18c   :  { %v865_v14 = vsel %vm344_vm5, %v2961_v17, -inf }
 0x18d   :  { %v984_v18 = vmul.f32 0.2, %v980_v16  ;;  %866 = vmax.xlane.f32.xlu0 %v865_v14  ;;  %vm982_vm3 = vcmp.gt.f32.partialorder %v980_v16, 0.0 }
 0x18f   :  { %v1103_v19 = vpop.permute.xlu1 %1102  ;;  %v986_v20 = vsel %vm982_vm3, %v980_v16, %v984_v18 }
 0x190   :  { %v1113_v25 = vadd.f32 %v2909_v15, %v1103_v19  ;;  %v2969_v27 = vsel %vm340_vm8, %v986_v20, -1e+30 }
 0x191   :  { %v990_v26 = vsel %vm344_vm5, %v2969_v27, -inf }
 0x192   :  { %v1117_v28 = vmul.f32 0.2, %v1113_v25  ;;  %991 = vmax.xlane.f32.xlu0 %v990_v26  ;;  %vm1115_vm6 = vcmp.gt.f32.partialorder %v1113_v25, 0.0 }
 0x194   :  { %v1234_v34 = vpop.permute.xlu1 %1233  ;;  %v1119_v35 = vsel %vm1115_vm6, %v1113_v25, %v1117_v28 }
 0x195   :  { %v1244_v38 = vadd.f32 %v1243_v33, %v1234_v34  ;;  %v2976_v39 = vsel %vm340_vm8, %v1119_v35, -1e+30 }
 0x196   :  { %v1123_v15 = vsel %vm344_vm5, %v2976_v39, -inf }
 0x197   :  { %v1248_v41 = vmul.f32 0.2, %v1244_v38  ;;  %1124 = vmax.xlane.f32.xlu0 %v1123_v15  ;;  %vm1246_vm7 = vcmp.gt.f32.partialorder %v1244_v38, 0.0 }
 0x198   :  { %v1238_v42 = vpop.permute.xlu1 %1237 }
 0x199   :  { %v1245_v43 = vadd.f32 %v1243_v33, %v1238_v42  ;;  %v1250_v44 = vsel %vm1246_vm7, %v1244_v38, %v1248_v41 }
 0x19a   :  { %v2982_v46 = vsel %vm340_vm8, %v1250_v44, -1e+30 }
 0x19b   :  { %v1249_v32 = vmul.f32 0.2, %v1245_v43  ;;  %v1254_v47 = vsel %vm344_vm5, %v2982_v46, -inf  ;;  %vm1247_vm9 = vcmp.gt.f32.partialorder %v1245_v43, 0.0 }
 0x19c   :  { %v2551_v52 = vpop.permute.xlu1 %2550  ;;  %1255 = vmax.xlane.f32.xlu0 %v1254_v47 }
 0x19d   :  { %v2553_v53 = vunpack.i.h.bf16 %v2551_v52  ;;  %v2552_v54 = vunpack.i.l.bf16 %v2551_v52  ;;  %v1251_v40 = vsel %vm1247_vm9, %v1245_v43, %v1249_v32 }
 0x19e   :  { %v2988_v56 = vsel %vm341_vm4, %v1251_v40, -1e+30 }
 0x19f   :  { %v2409_v57 = vpack.c.bf16 %v2553_v53, %v2552_v54  ;;  %v1257_v58 = vsel %vm344_vm5, %v2988_v56, -inf }
 0x1a0   :  { %1258 = vmax.xlane.f32.xlu1 %v1257_v58  ;;  %v2556_v60 = vpop.permute.xlu1 %2555 }
 0x1a1   :  { %2410 = vmatprep.subr.bf16.mxu0 %v2409_v57  ;;  %v2557_v24 = vunpack.i.l.bf16 %v2556_v60 }
 0x1a2   :  { %2412 = vmatpush3.bf16.msra.mxu0 %v2409_v57 }
 0x1a3   :  { %2418 = vmatprep.subr.bf16.mxu0 %v2832_v22 }
 0x1a4   :  { %v2997_v61 = vpop.permute.xlu1 %2560 }
 0x1a5   :  { %v2563_v40 = vunpack.i.h.bf16 %v2997_v61  ;;  %v2562_v57 = vunpack.i.l.bf16 %v2997_v61 }
 0x1a7   :  { %v2421_v61 = vpack.c.bf16 %v2563_v40, %v2562_v57 }
 0x1b1   :  { %2570 = vrot.lane.b32.xlu1 %v2830_v21, %s2726_s4 }
 0x1b2   :  { %2565 = vrot.lane.b32.xlu0 %v2830_v21, %s2725_s3 }
 0x1ee   :  { %v350_v63 = vpop.xlane.xlu1 %349 }
 0x1ef   :  { %v352_v0 = vsub.f32 %v2865_v48, %v350_v63 }
 0x1f1   :  { %v355_v62 = vmul.f32 1.442695, %v352_v0 }
 0x1f2   :  { %v475_v2 = vpop.xlane.xlu0 %474 }
 0x1f3   :  { %v477_v3 = vsub.f32 %v2882_v59, %v475_v2  ;;  %v2558_v59 = vunpack.i.h.bf16 %v2556_v60 }
 0x1f5   :  { %v480_v5 = vmul.f32 1.442695, %v477_v3 }
 0x1f6   :  { %v347_v10 = vpop.xlane.xlu0 %346 }
 0x1f7   :  { %2613 = vpow2.f32 %v480_v5  ;;  %v351_v11 = vsub.f32 %v2891_v1, %v347_v10  ;;  %v608_v13 = vpop.xlane.xlu1 %607 }
 0x1f8   :  { %v610_v16 = vsub.f32 %v2902_v12, %v608_v13  ;;  %2615 = vpow2.f32 %v355_v62  ;;  %v2413_v12 = vpack.c.bf16 %v2558_v59, %v2557_v24 }
 0x1f9   :  { %v353_v14 = vmul.f32 1.442695, %v351_v11 }
 0x1fa   :  { %v613_v21 = vmul.f32 1.442695, %v610_v16 }
 0x1fb   :  { %2617 = vpow2.f32 %v353_v14 }
 0x1fc   :  { %2619 = vpow2.f32 %v613_v21  ;;  %v739_v18 = vpop.xlane.xlu1 %738 }
 0x1fd   :  { %v741_v47 = vsub.f32 %v2914_v23, %v739_v18 }
 0x201   :  { %v2614_v19 = vpop.eup %2613  ;;  %v870_v48 = vpop.xlane.xlu1 %869 }
 0x202   :  { %v485_v20 = vsel %vm344_vm5, %v2614_v19, 0.0  ;;  %v3004_v25 = vpop.eup %2615 }
 0x203   :  { %486 = vadd.xlane.f32.xlu1 %v485_v20 }
 0x205   :  { %v3006_v26 = vpop.eup %2617 }
 0x206   :  { %v2620_v1 = vpop.eup %2619  ;;  %v995_v28 = vpop.xlane.xlu1 %994  ;;  %2320 = vmatprep.mubr.msk.f32.mxu1 %vm344_vm5, %v3006_v26 }
 0x207   :  { %v997_v33 = vsub.f32 %v2929_v45, %v995_v28  ;;  %2321 = vmatmul.mubr.msk.f32.vlgmr.msra.gmra.mrb[2].mxu1 %vm344_vm5, %v3004_v25  ;;  %v618_v34 = vsel %vm344_vm5, %v2620_v1, 0.0 }
 0x208   :  { %2408 = vmatpush3.bf16.msra.mxu1 %v2895_v4  ;;  %619 = vadd.xlane.f32.xlu1 %v618_v34 }
 0x209   :  { %v1000_v35 = vmul.f32 1.442695, %v997_v33  ;;  %2414 = vmatprep.subr.bf16.mxu1 %v2413_v12 }
 0x20a   :  { %v1128_v38 = vpop.xlane.xlu1 %1127 }
 0x20b   :  { %2621 = vpow2.f32 %v1000_v35  ;;  %v1130_v15 = vsub.f32 %v2935_v51, %v1128_v38  ;;  %v472_v41 = vpop.xlane.xlu0 %471 }
 0x20c   :  { %v476_v42 = vsub.f32 %v2942_v55, %v472_v41  ;;  %v744_v55 = vmul.f32 1.442695, %v741_v47 }
 0x20d   :  { %v1133_v43 = vmul.f32 1.442695, %v1130_v15 }
 0x20e   :  { %v478_v44 = vmul.f32 1.442695, %v476_v42 }
 0x20f   :  { %2623 = vpow2.f32 %v1133_v43 }
 0x210   :  { %2625 = vpow2.f32 %v478_v44  ;;  %v605_v45 = vpop.xlane.xlu0 %604 }
 0x211   :  { %v609_v32 = vsub.f32 %v2949_v49, %v605_v45  ;;  %v872_v49 = vsub.f32 %v2922_v36, %v870_v48 }
 0x213   :  { %v611_v4 = vmul.f32 1.442695, %v609_v32  ;;  %v875_v3 = vmul.f32 1.442695, %v872_v49 }
 0x215   :  { %v3019_v52 = vpop.eup %2621  ;;  %2627 = vpow2.f32 %v611_v4  ;;  %v736_v53 = vpop.xlane.xlu0 %735 }
 0x216   :  { %v740_v54 = vsub.f32 %v2955_v9, %v736_v53  ;;  %v1005_v51 = vsel %vm344_vm5, %v3019_v52, 0.0 }
 0x217   :  { %1006 = vadd.xlane.f32.xlu0 %v1005_v51 }
 0x218   :  { %v742_v58 = vmul.f32 1.442695, %v740_v54 }
 0x219   :  { %v3027_v23 = vpop.eup %2623 }
 0x21a   :  { %v2626_v60 = vpop.eup %2625  ;;  %2629 = vpow2.f32 %v742_v58  ;;  %v867_v63 = vpop.xlane.xlu0 %866  ;;  %v1138_v9 = vsel %vm344_vm5, %v3027_v23, 0.0 }
 0x21b   :  { %2631 = vpow2.f32 %v744_v55  ;;  %v871_v0 = vsub.f32 %v2961_v17, %v867_v63  ;;  %1139 = vadd.xlane.f32.xlu0 %v1138_v9  ;;  %2327 = vmatprep.mubr.msk.f32.mxu1 %vm344_vm5, %v2626_v60  ;;  %v482_v2 = vsel %vm344_vm5, %v2626_v60, 0.0  ;;  %v1461_v63 = vld [vmem:[%s3491_s7 + $0x80] sm:$0xff]  ;;  %v1462_v9 = vld [vmem:[%s3491_s7 + $0x88] sm:$0xff] }
 0x21c   :  { %2328 = vmatmul.mubr.msk.f32.vlgmr.msra.gmra.mrb[4].mxu1 %vm344_vm5, %v2614_v19  ;;  %483 = vadd.xlane.f32.xlu1 %v482_v2  ;;  %v2433_v2 = vpack.c.bf16 %v1462_v9, %v1461_v63 }
 0x21d   :  { %v873_v36 = vmul.f32 1.442695, %v871_v0  ;;  %2416 = vmatpush3.bf16.msra.mxu1 %v2413_v12  ;;  %v1525_v0 = vld [vmem:[%s3493_s9 + $0x80] sm:$0xff] }
 0x21e   :  { %2422 = vmatprep.subr.bf16.mxu1 %v2421_v61 }
 0x21f   :  { %v2628_v5 = vpop.eup %2627  ;;  %2633 = vpow2.f32 %v873_v36  ;;  %v992_v62 = vpop.xlane.xlu0 %991 }
 0x220   :  { %2635 = vpow2.f32 %v875_v3  ;;  %v996_v10 = vsub.f32 %v2969_v27, %v992_v62  ;;  %2334 = vmatprep.mubr.msk.f32.mxu0 %vm344_vm5, %v2628_v5  ;;  %v1445_v62 = vld [vmem:[%s3491_s7] sm:$0xff] }
 0x221   :  { %2335 = vmatmul.mubr.msk.f32.vlgmr.msra.gmra.mrb[6].mxu0 %vm344_vm5, %v2620_v1  ;;  %v360_v1 = vsel %vm344_vm5, %v3004_v25, 0.0  ;;  %v357_v25 = vsel %vm344_vm5, %v3006_v26, 0.0  ;;  %v615_v26 = vsel %vm344_vm5, %v2628_v5, 0.0 }
 0x222   :  { %v998_v17 = vmul.f32 1.442695, %v996_v10  ;;  %2420 = vmatpush3.bf16.msra.mxu0 %v2832_v22  ;;  %v1446_v10 = vld [vmem:[%s3491_s7 + $0x8] sm:$0xff] }
 0x224   :  { %v2630_v11 = vpop.eup %2629  ;;  %2637 = vpow2.f32 %v998_v17  ;;  %v1125_v13 = vpop.xlane.xlu0 %1124  ;;  %v1509_v17 = vld [vmem:[%s3493_s9] sm:$0xff] }
 0x225   :  { %v2632_v16 = vpop.eup %2631  ;;  %v1129_v14 = vsub.f32 %v2976_v39, %v1125_v13  ;;  %2341 = vmatprep.mubr.msk.f32.mxu1 %vm344_vm5, %v2630_v11  ;;  %v746_v21 = vsel %vm344_vm5, %v2630_v11, 0.0  ;;  %v2435_v11 = vpack.c.bf16 %v1446_v10, %v1445_v62  ;;  %v1510_v13 = vld [vmem:[%s3493_s9 + $0x8] sm:$0xff]  ;;  %v1516_v10 = vld [vmem:[%s3493_s9 + $0x38] sm:$0xff] }
 0x226   :  { %2342 = vmatmul.mubr.msk.f32.vlgmr.msra.gmra.mrb[6].mxu1 %vm344_vm5, %v2632_v16  ;;  %747 = vadd.xlane.f32.xlu1 %v746_v21  ;;  %v749_v22 = vsel %vm344_vm5, %v2632_v16, 0.0  ;;  %v2467_v16 = vpack.c.bf16 %v1510_v13, %v1509_v17  ;;  %v1464_v21 = vld [vmem:[%s3491_s7 + $0x98] sm:$0xff] }
 0x227   :  { %v1131_v27 = vmul.f32 1.442695, %v1129_v14  ;;  %2424 = vmatpush3.bf16.msra.mxu1 %v2421_v61  ;;  %v1526_v61 = vld [vmem:[%s3493_s9 + $0x88] sm:$0xff]  ;;  %v1463_v14 = vld [vmem:[%s3491_s7 + $0x90] sm:$0xff] }
 0x228   :  { %v2465_v36 = vpack.c.bf16 %v1526_v61, %v1525_v0  ;;  %v1452_v61 = vld [vmem:[%s3491_s7 + $0x38] sm:$0xff] }
 0x229   :  { %v2634_v18 = vpop.eup %2633  ;;  %2639 = vpow2.f32 %v1131_v27  ;;  %v1256_v19 = vpop.xlane.xlu0 %1255  ;;  %v1527_v27 = vld [vmem:[%s3493_s9 + $0x90] sm:$0xff] }
 0x22a   :  { %v2636_v48 = vpop.eup %2635  ;;  %v1260_v20 = vsub.f32 %v2982_v46, %v1256_v19  ;;  %750 = vadd.xlane.f32.xlu1 %v749_v22  ;;  %2348 = vmatprep.mubr.msk.f32.mxu0 %vm344_vm5, %v2634_v18  ;;  %v877_v53 = vsel %vm344_vm5, %v2634_v18, 0.0  ;;  %v2437_v19 = vpack.c.bf16 %v1464_v21, %v1463_v14  ;;  %v1528_v22 = vld [vmem:[%s3493_s9 + $0x98] sm:$0xff] }
 0x22b   :  { %2349 = vmatmul.mubr.msk.f32.vlgmr.msra.gmra.mrb[8].mxu0 %vm344_vm5, %v2636_v48 }
 0x22c   :  { %v1262_v39 = vmul.f32 1.442695, %v1260_v20 }
 0x22d   :  { %v1259_v59 = vpop.xlane.xlu1 %1258  ;;  %v2566_v24 = vpop.permute.xlu0 %2565 }
 0x22e   :  { %v2638_v28 = vpop.eup %2637  ;;  %2641 = vpow2.f32 %v1262_v39  ;;  %v1261_v12 = vsub.f32 %v2988_v56, %v1259_v59  ;;  %v2568_v33 = vunpack.i.h.bf16 %v2566_v24  ;;  %v2567_v34 = vunpack.i.l.bf16 %v2566_v24  ;;  %361 = vadd.xlane.f32.xlu1 %v360_v1  ;;  %v1447_v59 = vld [vmem:[%s3491_s7 + $0x10] sm:$0xff]  ;;  %v1448_v24 = vld [vmem:[%s3491_s7 + $0x18] sm:$0xff] }
 0x22f   :  { %2355 = vmatprep.mubr.msk.f32.mxu1 %vm344_vm5, %v2638_v28  ;;  %v1002_v46 = vsel %vm344_vm5, %v2638_v28, 0.0  ;;  %v2469_v39 = vpack.c.bf16 %v1528_v22, %v1527_v27  ;;  %v1511_v1 = vld [vmem:[%s3493_s9 + $0x10] sm:$0xff]  ;;  %v1469_v27 = vld [vmem:[%s3491_s7 + $0xc0] sm:$0xff]  ;;  %v1534_v22 = vld [vmem:[%s3493_s9 + $0xc8] sm:$0xff] }
 0x230   :  { %v1264_v35 = vmul.f32 1.442695, %v1261_v12  ;;  %v2425_v38 = vpack.c.bf16 %v2568_v33, %v2567_v34  ;;  %2356 = vmatmul.mubr.msk.f32.vlgmr.msra.gmra.mrb[8].mxu1 %vm344_vm5, %v3019_v52  ;;  %1003 = vadd.xlane.f32.xlu0 %v1002_v46  ;;  %v880_v52 = vsel %vm344_vm5, %v2636_v48, 0.0  ;;  %v2439_v33 = vpack.c.bf16 %v1448_v24, %v1447_v59  ;;  %v1512_v34 = vld [vmem:[%s3493_s9 + $0x18] sm:$0xff] }
 0x231   :  { %v2571_v15 = vpop.permute.xlu1 %2570  ;;  %v2471_v46 = vpack.c.bf16 %v1512_v34, %v1511_v1  ;;  %v1518_v1 = vld [vmem:[%s3493_s9 + $0x48] sm:$0xff] }
 0x232   :  { %2643 = vpow2.f32 %v1264_v35  ;;  %v2573_v41 = vunpack.i.h.bf16 %v2571_v15  ;;  %v2572_v56 = vunpack.i.l.bf16 %v2571_v15  ;;  %358 = vadd.xlane.f32.xlu1 %v357_v25  ;;  %2426 = vmatprep.subr.bf16.mxu0 %v2425_v38  ;;  %v1465_v35 = vld [vmem:[%s3491_s7 + $0xa0] sm:$0xff] }
 0x233   :  { %v2640_v42 = vpop.eup %2639  ;;  %2428 = vmatpush3.bf16.msra.mxu0 %v2425_v38  ;;  %v1466_v38 = vld [vmem:[%s3491_s7 + $0xa8] sm:$0xff]  ;;  %v1529_v15 = vld [vmem:[%s3493_s9 + $0xa0] sm:$0xff] }
 0x234   :  { %v2429_v43 = vpack.c.bf16 %v2573_v41, %v2572_v56  ;;  %2362 = vmatprep.mubr.msk.f32.mxu0 %vm344_vm5, %v2640_v42  ;;  %v1135_v44 = vsel %vm344_vm5, %v2640_v42, 0.0  ;;  %2434 = vmatprep.subr.bf16.mxu0 %v2433_v2  ;;  %v2441_v25 = vpack.c.bf16 %v1466_v38, %v1465_v35  ;;  %v1530_v41 = vld [vmem:[%s3493_s9 + $0xa8] sm:$0xff]  ;;  %v1449_v56 = vld [vmem:[%s3491_s7 + $0x20] sm:$0xff]  ;;  %v1451_v2 = vld [vmem:[%s3491_s7 + $0x30] sm:$0xff] }
 0x235   :  { %1136 = vadd.xlane.f32.xlu0 %v1135_v44  ;;  %v1450_v42 = vld [vmem:[%s3491_s7 + $0x28] sm:$0xff]  ;;  %v2473_v44 = vpack.c.bf16 %v1530_v41, %v1529_v15  ;;  %v2447_v62 = vpack.c.bf16 %v1452_v61, %v1451_v2  ;;  %v1536_v35 = vld [vmem:[%s3493_s9 + $0xd8] sm:$0xff]  ;;  %v1455_v38 = vld [vmem:[%s3491_s7 + $0x50] sm:$0xff] }
 0x236   :  { %2363 = vmatmul.mubr.msk.f32.vlgmr.msra.gmra.mrb[10].mxu0 %vm344_vm5, %v3027_v23  ;;  %2430 = vmatprep.subr.bf16.mxu1 %v2429_v43  ;;  %v1456_v41 = vld [vmem:[%s3491_s7 + $0x58] sm:$0xff]  ;;  %v1521_v2 = vld [vmem:[%s3493_s9 + $0x60] sm:$0xff]  ;;  %v1522_v61 = vld [vmem:[%s3493_s9 + $0x68] sm:$0xff] }
 0x237   :  { %2432 = vmatpush3.bf16.msra.mxu1 %v2429_v43  ;;  %2436 = vmatpush3.bf16.msra.mxu0 %v2435_v11 }
 0x238   :  { %v2642_v45 = vpop.eup %2641  ;;  %2466 = vmatprep.subr.bf16.mxu1 %v2465_v36  ;;  %2438 = vmatprep.subr.bf16.mxu0 %v2437_v19  ;;  %v1515_v36 = vld [vmem:[%s3493_s9 + $0x30] sm:$0xff] }
 0x239   :  { %616 = vadd.xlane.f32.xlu0 %v615_v26  ;;  %2369 = vmatprep.mubr.msk.f32.mxu1 %vm344_vm5, %v2642_v45  ;;  %v1266_v47 = vsel %vm344_vm5, %v2642_v45, 0.0  ;;  %v2443_v45 = vpack.c.bf16 %v1450_v42, %v1449_v56  ;;  %v1513_v26 = vld [vmem:[%s3493_s9 + $0x20] sm:$0xff]  ;;  %v2479_v11 = vpack.c.bf16 %v1516_v10, %v1515_v36  ;;  %v1519_v56 = vld [vmem:[%s3493_s9 + $0x50] sm:$0xff]  ;;  %v1520_v42 = vld [vmem:[%s3493_s9 + $0x58] sm:$0xff] }
 0x23b   :  { %2440 = vmatpush3.bf16.msra.mxu0 %v2439_v33  ;;  %v1472_v33 = vld [vmem:[%s3491_s7 + $0xd8] sm:$0xff] }
 0x23c   :  { %v2644_v32 = vpop.eup %2643  ;;  %2442 = vmatprep.subr.bf16.mxu0 %v2441_v25 }
 0x23d   :  { %2370 = vmatmul.mubr.msk.f32.vlgmr.msra.gmra.mrb[10].mxu1 %vm344_vm5, %v2644_v32  ;;  %1267 = vadd.xlane.f32.xlu0 %v1266_v47  ;;  %v1269_v4 = vsel %vm344_vm5, %v2644_v32, 0.0  ;;  %v1514_v32 = vld [vmem:[%s3493_s9 + $0x28] sm:$0xff]  ;;  %v1467_v47 = vld [vmem:[%s3491_s7 + $0xb0] sm:$0xff] }
 0x23e   :  { %2468 = vmatpush3.bf16.msra.mxu1 %v2467_v16 }
 0x23f   :  { %2470 = vmatprep.subr.bf16.mxu1 %v2469_v39  ;;  %2444 = vmatpush3.bf16.msra.mxu0 %v2443_v45  ;;  %v2487_v45 = vpack.c.bf16 %v1520_v42, %v1519_v56  ;;  %v1477_v56 = vld [vmem:[%s3492_s8] sm:$0xff]  ;;  %v1478_v42 = vld [vmem:[%s3492_s8 + $0x8] sm:$0xff] }
 0x241   :  { %1270 = vadd.xlane.f32.xlu0 %v1269_v4 }
 0x242   :  { %2472 = vmatpush3.bf16.msra.mxu1 %v2471_v46 }
 0x243   :  { %2474 = vmatprep.subr.bf16.mxu1 %v2473_v44  ;;  %v2455_v44 = vpack.c.bf16 %v1456_v41, %v1455_v38 }
 0x245   :  { %881 = vadd.xlane.f32.xlu0 %v880_v52 }
 0x249   :  { %878 = vadd.xlane.f32.xlu0 %v877_v53  ;;  %v2475_v53 = vpack.c.bf16 %v1514_v32, %v1513_v26  ;;  %v1473_v26 = vld [vmem:[%s3491_s7 + $0xe0] sm:$0xff]  ;;  %v1474_v32 = vld [vmem:[%s3491_s7 + $0xe8] sm:$0xff] }
 0x24b   :  { %2476 = vmatpush3.bf16.msra.mxu1 %v2475_v53  ;;  %v1457_v53 = vld [vmem:[%s3491_s7 + $0x60] sm:$0xff] }
 0x290   :  { %v487_v49 = vpop.xlane.xlu1 %486 }
 0x295   :  { %v620_v23 = vpop.xlane.xlu1 %619 }
 0x296   :  { %2645 = vrcp.f32 %v620_v23  ;;  %v1531_v23 = vld [vmem:[%s3493_s9 + $0xb0] sm:$0xff] }
 0x2a0   :  { %v2646_v48 = vpop.eup %2645 }
 0x2a4   :  { %v3067_v54 = vpop.xlane.xlu0 %1006 }
 0x2a8   :  { %v3071_v55 = vpop.xlane.xlu0 %1139 }
 0x2a9   :  { %v484_v18 = vpop.xlane.xlu1 %483 }
 0x2b3   :  { %v748_v14 = vpop.xlane.xlu1 %747 }
 0x2b7   :  { %v751_v15 = vpop.xlane.xlu1 %750 }
 0x2bd   :  { %v3075_v57 = vpop.xlane.xlu0 %1003 }
 0x2c2   :  { %v3077_v58 = vpop.xlane.xlu0 %1136 }
 0x2c6   :  { %v617_v60 = vpop.xlane.xlu0 %616 }
 0x2c7   :  { %2647 = vrcp.f32 %v617_v60  ;;  %v1532_v60 = vld [vmem:[%s3493_s9 + $0xb8] sm:$0xff] }
 0x2c8   :  { %2649 = vrcp.f32 %v487_v49  ;;  %v1468_v49 = vld [vmem:[%s3491_s7 + $0xb8] sm:$0xff]  ;;  %v2477_v0 = vpack.c.bf16 %v1532_v60, %v1531_v23 }
 0x2c9   :  { %2651 = vrcp.f32 %v484_v18  ;;  %v2445_v9 = vpack.c.bf16 %v1468_v49, %v1467_v47  ;;  %v1470_v18 = vld [vmem:[%s3491_s7 + $0xc8] sm:$0xff]  ;;  %v1537_v47 = vld [vmem:[%s3493_s9 + $0xe0] sm:$0xff] }
 0x2ca   :  { %2478 = vmatprep.subr.bf16.mxu1 %v2477_v0  ;;  %2653 = vrcp.f32 %v3071_v55  ;;  %v2449_v55 = vpack.c.bf16 %v1470_v18, %v1469_v27  ;;  %v1458_v49 = vld [vmem:[%s3491_s7 + $0x68] sm:$0xff]  ;;  %v1539_v27 = vld [vmem:[%s3493_s9 + $0xf0] sm:$0xff] }
 0x2cb   :  { %2446 = vmatprep.subr.bf16.mxu0 %v2445_v9  ;;  %2655 = vrcp.f32 %v3077_v58  ;;  %2480 = vmatpush3.bf16.msra.mxu1 %v2479_v11  ;;  %v1517_v58 = vld [vmem:[%s3493_s9 + $0x40] sm:$0xff]  ;;  %v2459_v0 = vpack.c.bf16 %v1458_v49, %v1457_v53 }
 0x2cc   :  { %2448 = vmatpush3.bf16.msra.mxu0 %v2447_v62  ;;  %2657 = vrcp.f32 %v3067_v54  ;;  %v1535_v54 = vld [vmem:[%s3493_s9 + $0xd0] sm:$0xff]  ;;  %v1481_v53 = vld [vmem:[%s3492_s8 + $0x20] sm:$0xff] }
 0x2cd   :  { %2450 = vmatprep.subr.bf16.mxu0 %v2449_v55  ;;  %2659 = vrcp.f32 %v748_v14  ;;  %v2485_v25 = vpack.c.bf16 %v1536_v35, %v1535_v54  ;;  %v1476_v14 = vld [vmem:[%s3491_s7 + $0xf8] sm:$0xff]  ;;  %v1459_v55 = vld [vmem:[%s3491_s7 + $0x70] sm:$0xff]  ;;  %v1497_v49 = vld [vmem:[%s3492_s8 + $0xa0] sm:$0xff] }
 0x2ce   :  { %2661 = vrcp.f32 %v3075_v57  ;;  %v1538_v57 = vld [vmem:[%s3493_s9 + $0xe8] sm:$0xff] }
 0x2cf   :  { %2663 = vrcp.f32 %v751_v15  ;;  %v2489_v9 = vpack.c.bf16 %v1538_v57, %v1537_v47  ;;  %v1480_v47 = vld [vmem:[%s3492_s8 + $0x18] sm:$0xff] }
 0x2d1   :  { %v2648_v43 = vpop.eup %2647 }
 0x2d2   :  { %v2650_v17 = vpop.eup %2649 }
 0x2d3   :  { %v2652_v19 = vpop.eup %2651 }
 0x2d4   :  { %v2654_v23 = vpop.eup %2653 }
 0x2d5   :  { %v2656_v36 = vpop.eup %2655 }
 0x2da   :  { %v3069_v51 = vpop.f32.mrb[2].mxu1 }
 0x2db   :  { %v3073_v40 = vpop.f32.mrb[3].mxu1 }
 0x2ef   :  { %v3091_v3 = vpop.f32.mrb[4].mxu1 }
 0x2f0   :  { %v3093_v5 = vpop.f32.mrb[5].mxu1  ;;  %v580_v13 = vmul.f32 %v2650_v17, %v3091_v3  ;;  %v1533_v3 = vld [vmem:[%s3493_s9 + $0xc0] sm:$0xff]  ;;  %v2491_v17 = vpack.c.bf16 %v1522_v61, %v1521_v2  ;;  %v1483_v2 = vld [vmem:[%s3492_s8 + $0x30] sm:$0xff] }
 0x2f1   :  { %v579_v39 = vmul.f32 %v2652_v19, %v3093_v5  ;;  %v2481_v59 = vpack.c.bf16 %v1534_v22, %v1533_v3  ;;  %v1471_v5 = vld [vmem:[%s3491_s7 + $0xd0] sm:$0xff]  ;;  %v1540_v19 = vld [vmem:[%s3493_s9 + $0xf8] sm:$0xff] }
 0x2f2   :  { %v2453_v46 = vpack.c.bf16 %v1472_v33, %v1471_v5  ;;  %v1460_v22 = vld [vmem:[%s3491_s7 + $0x78] sm:$0xff]  ;;  %v1499_v61 = vld [vmem:[%s3492_s8 + $0xb0] sm:$0xff] }
 0x2f3   :  { %2482 = vmatprep.subr.bf16.mxu1 %v2481_v59  ;;  %v1523_v59 = vld [vmem:[%s3493_s9 + $0x70] sm:$0xff] }
 0x2f4   :  { %v2336_v20 = vpop.f32.mrb[6].mxu0 }
 0x2f5   :  { %v711_v28 = vmul.f32 %v2646_v48, %v2336_v20  ;;  %v699_v12 = vpop.f32.mrb[7].mxu0  ;;  %v1453_v48 = vld [vmem:[%s3491_s7 + $0x40] sm:$0xff]  ;;  %v1454_v20 = vld [vmem:[%s3491_s7 + $0x48] sm:$0xff] }
 0x2f6   :  { %v710_v4 = vmul.f32 %v2648_v43, %v699_v12  ;;  %v2451_v24 = vpack.c.bf16 %v1454_v20, %v1453_v48  ;;  %v1268_v43 = vpop.xlane.xlu0 %1267  ;;  %v2658_v48 = vpop.eup %2657  ;;  %v2493_v20 = vpack.c.bf16 %v1540_v19, %v1539_v27  ;;  %v1486_v27 = vld [vmem:[%s3492_s8 + $0x48] sm:$0xff]  ;;  %v1487_v19 = vld [vmem:[%s3492_s8 + $0x50] sm:$0xff] }
 0x2f7   :  { %1375 = vrot.lane.b32.xlu1 %v711_v28, %s2725_s3  ;;  %v2483_v28 = vpack.c.bf16 %v1518_v1, %v1517_v58  ;;  %2665 = vrcp.f32 %v1268_v43  ;;  %v2660_v58 = vpop.eup %2659  ;;  %v1494_v43 = vld [vmem:[%s3492_s8 + $0x88] sm:$0xff] }
 0x2f8   :  { %2452 = vmatpush3.bf16.msra.mxu0 %v2451_v24  ;;  %v1524_v24 = vld [vmem:[%s3493_s9 + $0x78] sm:$0xff] }
 0x2f9   :  { %v3159_v52 = vpop.f32.mrb[6].mxu1  ;;  %2484 = vmatpush3.bf16.msra.mxu1 %v2483_v28  ;;  %2454 = vmatprep.subr.bf16.mxu0 %v2453_v46  ;;  %v2495_v28 = vpack.c.bf16 %v1524_v24, %v1523_v59  ;;  %v2662_v46 = vpop.eup %2661  ;;  %v1489_v24 = vld [vmem:[%s3492_s8 + $0x60] sm:$0xff] }
 0x2fa   :  { %v3170_v63 = vpop.f32.mrb[7].mxu1  ;;  %2486 = vmatprep.subr.bf16.mxu1 %v2485_v25  ;;  %v1271_v18 = vpop.xlane.xlu0 %1270 }
 0x2fb   :  { %1373 = vrot.lane.b32.xlu1 %v710_v4, %s2725_s3  ;;  %v2457_v4 = vpack.c.bf16 %v1474_v32, %v1473_v26  ;;  %2667 = vrcp.f32 %v1271_v18  ;;  %v841_v5 = vmul.f32 %v2660_v58, %v3170_v63  ;;  %v2664_v35 = vpop.eup %2663  ;;  %v1495_v26 = vld [vmem:[%s3492_s8 + $0x90] sm:$0xff]  ;;  %v1502_v18 = vld [vmem:[%s3492_s8 + $0xc8] sm:$0xff]  ;;  %v1505_v58 = vld [vmem:[%s3492_s8 + $0xe0] sm:$0xff] }
 0x2fc   :  { %2456 = vmatpush3.bf16.msra.mxu0 %v2455_v44  ;;  %v2576_v44 = vpack.i.bf16 %v1478_v42, %v1494_v43 }
 0x2fd   :  { %2488 = vmatpush3.bf16.msra.mxu1 %v2487_v45  ;;  %2458 = vmatprep.subr.bf16.mxu0 %v2457_v4  ;;  %v1479_v45 = vld [vmem:[%s3492_s8 + $0x10] sm:$0xff]  ;;  %v1496_v4 = vld [vmem:[%s3492_s8 + $0x98] sm:$0xff] }
 0x2fe   :  { %v3186_v16 = vpop.f32.mrb[8].mxu0  ;;  %2490 = vmatprep.subr.bf16.mxu1 %v2489_v9  ;;  %v2578_v32 = vpack.i.bf16 %v1479_v45, %v1495_v26  ;;  %v2580_v57 = vpack.i.bf16 %v1480_v47, %v1496_v4  ;;  %v1498_v9 = vld [vmem:[%s3492_s8 + $0xa8] sm:$0xff]  ;;  %v53_v47 = vld [vmem:[%s3490_s6] sm:$0x3] }
 0x2ff   :  { %v3189_v21 = vpop.f32.mrb[9].mxu0  ;;  %1367 = vrot.lane.b32.xlu1 %v580_v13, %s2726_s4  ;;  %v1475_v13 = vld [vmem:[%s3491_s7 + $0xf0] sm:$0xff] }
 0x300   :  { %2460 = vmatpush3.bf16.msra.mxu0 %v2459_v0  ;;  %v2461_v3 = vpack.c.bf16 %v1476_v14, %v1475_v13  ;;  %v1501_v13 = vld [vmem:[%s3492_s8 + $0xc0] sm:$0xff] }
 0x301   :  { %2492 = vmatpush3.bf16.msra.mxu1 %v2491_v17  ;;  %v2666_v15 = vpop.eup %2665 }
 0x302   :  { %2462 = vmatprep.subr.bf16.mxu0 %v2461_v3  ;;  %2494 = vmatprep.subr.bf16.mxu1 %v2493_v20  ;;  %v2592_v3 = vpack.i.bf16 %v1486_v27, %v1502_v18  ;;  %v1488_v20 = vld [vmem:[%s3492_s8 + $0x58] sm:$0xff] }
 0x303   :  { %v3219_v12 = vpop.f32.mrb[8].mxu1  ;;  %1365 = vrot.lane.b32.xlu1 %v579_v39, %s2726_s4  ;;  %v2463_v39 = vpack.c.bf16 %v1460_v22, %v1459_v55  ;;  %v1503_v55 = vld [vmem:[%s3492_s8 + $0xd0] sm:$0xff] }
 0x304   :  { %v3228_v34 = vpop.f32.mrb[9].mxu1  ;;  %v1100_v1 = vmul.f32 %v2658_v48, %v3219_v12  ;;  %v842_v12 = vmul.f32 %v2664_v35, %v3159_v52  ;;  %v1493_v52 = vld [vmem:[%s3492_s8 + $0x80] sm:$0xff]  ;;  %v2594_v22 = vpack.i.bf16 %v1487_v19, %v1503_v55  ;;  %v362_v48 = vpop.xlane.xlu1 %361  ;;  %v1491_v35 = vld [vmem:[%s3492_s8 + $0x70] sm:$0xff] }
 0x305   :  { %2464 = vmatpush3.bf16.msra.mxu0 %v2463_v39  ;;  %2496 = vmatpush3.bf16.msra.mxu1 %v2495_v28  ;;  %v1099_v38 = vmul.f32 %v2662_v46, %v3228_v34  ;;  %v2668_v25 = vpop.eup %2667  ;;  %v2574_v34 = vpack.i.bf16 %v1477_v56, %v1493_v52  ;;  %v1504_v39 = vld [vmem:[%s3492_s8 + $0xd8] sm:$0xff]  ;;  %v2598_v28 = vpack.i.bf16 %v1489_v24, %v1505_v58 }
 0x306   :  { %v2596_v59 = vpack.i.bf16 %v1488_v20, %v1504_v39 }
 0x309   :  { %v2364_v60 = vpop.f32.mrb[10].mxu0 }
 0x30a   :  { %v1231_v62 = vmul.f32 %v2654_v23, %v2364_v60  ;;  %v1219_v10 = vpop.f32.mrb[11].mxu0  ;;  %v2582_v23 = vpack.i.bf16 %v1481_v53, %v1497_v49  ;;  %v1482_v60 = vld [vmem:[%s3492_s8 + $0x28] sm:$0xff] }
 0x30b   :  { %v1230_v11 = vmul.f32 %v2656_v36, %v1219_v10  ;;  %v2584_v0 = vpack.i.bf16 %v1482_v60, %v1498_v9  ;;  %v2586_v36 = vpack.i.bf16 %v1483_v2, %v1499_v61  ;;  %v1500_v10 = vld [vmem:[%s3492_s8 + $0xb8] sm:$0xff] }
 0x30c   :  { %1399 = vrot.lane.b32.xlu0 %v1231_v62, %s2725_s3  ;;  %v1484_v62 = vld [vmem:[%s3492_s8 + $0x38] sm:$0xff] }
 0x30d   :  { %1397 = vrot.lane.b32.xlu1 %v1230_v11, %s2725_s3  ;;  %v2588_v17 = vpack.i.bf16 %v1484_v62, %v1500_v10  ;;  %v1485_v11 = vld [vmem:[%s3492_s8 + $0x40] sm:$0xff] }
 0x30e   :  { %v2590_v14 = vpack.i.bf16 %v1485_v11, %v1501_v13  ;;  %v1434_v13 = vrot.slane %v53_v47, %v458_v31 }
 0x310   :  { %v2371_v33 = vpop.f32.mrb[10].mxu1  ;;  %1391 = vrot.lane.b32.xlu0 %v1100_v1, %s2726_s4  ;;  %v359_v1 = vpop.xlane.xlu1 %358 }
 0x311   :  { %v1350_v54 = vpop.f32.mrb[11].mxu1  ;;  %1381 = vrot.lane.b32.xlu1 %v841_v5, %s2720_s0  ;;  %v1362_v41 = vmul.f32 %v2668_v25, %v2371_v33  ;;  %v1490_v5 = vld [vmem:[%s3492_s8 + $0x68] sm:$0xff]  ;;  %v1508_v25 = vld [vmem:[%s3492_s8 + $0xf8] sm:$0xff]  ;;  %2669 = vrcp.f32 %v359_v1 }
 0x312   :  { %v1361_v63 = vmul.f32 %v2666_v15, %v1350_v54  ;;  %v1506_v33 = vld [vmem:[%s3492_s8 + $0xe8] sm:$0xff]  ;;  %2671 = vrcp.f32 %v362_v48 }
 0x313   :  { %v2600_v54 = vpack.i.bf16 %v1490_v5, %v1506_v33 }
 0x314   :  { %1389 = vrot.lane.b32.xlu0 %v1099_v38, %s2726_s4  ;;  %v1507_v38 = vld [vmem:[%s3492_s8 + $0xf0] sm:$0xff] }
 0x315   :  { %1383 = vrot.lane.b32.xlu1 %v842_v12, %s2720_s0  ;;  %v2602_v12 = vpack.i.bf16 %v1491_v35, %v1507_v38 }
 0x318   :  { %1405 = vrot.lane.b32.xlu0 %v1361_v63, %s2720_s0  ;;  %v1492_v63 = vld [vmem:[%s3492_s8 + $0x78] sm:$0xff] }
 0x319   :  { %v2604_v56 = vpack.i.bf16 %v1492_v63, %v1508_v25 }
 0x31b   :  { %v2670_v43 = vpop.eup %2669 }
 0x31c   :  { %1407 = vrot.lane.b32.xlu0 %v1362_v41, %s2720_s0  ;;  %v882_v41 = vpop.xlane.xlu0 %881  ;;  %v2672_v4 = vpop.eup %2671 }
 0x33a   :  { %2575 = vxpose.xlu0.b32.start [1/16] (narrow) %v2574_v34, 8  ;;  %v879_v34 = vpop.xlane.xlu0 %878 }
 0x33b   :  { %2673 = vrcp.f32 %v879_v34 }
 0x33c   :  { %2675 = vrcp.f32 %v882_v41 }
 0x33e   :  { %2577 = vxpose.xlu0.b32.cont [2/16] (narrow) %v2576_v44, 8  ;;  %v446_v44 = vmul.f32 %v2670_v43, %v3073_v40 }
 0x342   :  { %2579 = vxpose.xlu0.b32.cont [3/16] (narrow) %v2578_v32, 8 }
 0x345   :  { %v2674_v60 = vpop.eup %2673 }
 0x346   :  { %2581 = vxpose.xlu0.b32.cont [4/16] (narrow) %v2580_v57, 8  ;;  %v447_v57 = vmul.f32 %v2672_v4, %v3069_v51  ;;  %v966_v2 = vmul.f32 %v2674_v60, %v3189_v21 }
 0x34a   :  { %2583 = vxpose.xlu0.b32.cont [5/16] (narrow) %v2582_v23, 8  ;;  %v1430_v23 = vrot.slane %v53_v47, %v2843_v30 }
 0x34e   :  { %2585 = vxpose.xlu0.b32.cont [6/16] (narrow) %v2584_v0, 8 }
 0x352   :  { %2587 = vxpose.xlu0.b32.cont [7/16] (narrow) %v2586_v36, 8 }
 0x356   :  { %2589 = vxpose.xlu0.b32.cont [8/16] (narrow) %v2588_v17, 8  ;;  %v2676_v17 = vpop.eup %2675 }
 0x35a   :  { %2591 = vxpose.xlu0.b32.cont [9/16] (narrow) %v2590_v14, 8  ;;  %v967_v14 = vmul.f32 %v2676_v17, %v3186_v16  ;;  %v2038_v17 = vld [vmem:[%s3495_s11 + $0x8] sm:$0xff] }
 0x35e   :  { %2593 = vxpose.xlu0.b32.cont [10/16] (narrow) %v2592_v3, 8 }
 0x362   :  { %2595 = vxpose.xlu0.b32.cont [11/16] (narrow) %v2594_v22, 8 }
 0x366   :  { %2597 = vxpose.xlu0.b32.cont [12/16] (narrow) %v2596_v59, 8 }
 0x369   :  { %v1376_v46 = vpop.permute.xlu1 %1375 }
 0x36a   :  { %2599 = vxpose.xlu0.b32.cont [13/16] (narrow) %v2598_v28, 8 }
 0x36d   :  { %v1374_v15 = vpop.permute.xlu1 %1373 }
 0x36e   :  { %2601 = vxpose.xlu0.b32.cont [14/16] (narrow) %v2600_v54, 8 }
 0x371   :  { %v1368_v52 = vpop.permute.xlu1 %1367 }
 0x372   :  { %2603 = vxpose.xlu0.b32.cont [15/16] (narrow) %v2602_v12, 8  ;;  %v1413_v9 = vsel %vm1411_vm10, %v447_v57, %v1368_v52 }
 0x373   :  { %v1416_v51 = vsel %vm1414_vm12, %v1413_v9, %v1376_v46 }
 0x375   :  { %v1366_v42 = vpop.permute.xlu1 %1365 }
 0x376   :  { %2605 = vxpose.xlu0.b32.end [16/16] (narrow) %v2604_v56, 8  ;;  %v1412_v32 = vsel %vm1411_vm10, %v446_v44, %v1366_v42 }
 0x377   :  { %v1415_v49 = vsel %vm1414_vm12, %v1412_v32, %v1374_v15 }
 0x37e   :  { %v1400_v45 = vpop.permute.xlu0 %1399 }
 0x37f   :  { %v1398_v26 = vpop.permute.xlu1 %1397 }
 0x382   :  { %v1392_v53 = vpop.permute.xlu0 %1391 }
 0x383   :  { %v1382_v40 = vpop.permute.xlu1 %1381  ;;  %v1421_v21 = vsel %vm1411_vm10, %v967_v14, %v1392_v53  ;;  %v2040_v14 = vld [vmem:[%s3495_s11 + $0x18] sm:$0xff] }
 0x384   :  { %v1418_v0 = vsel %vm1417_vm11, %v1415_v49, %v1382_v40  ;;  %v1423_v59 = vsel %vm1414_vm12, %v1421_v21, %v1400_v45  ;;  %v2174_v21 = vld [vmem:[%s3494_s10] ss:$0 sm:$0xff] }
 0x385   :  { %v1437_v36 = vadd.f32 %v1430_v23, %v1418_v0 }
 0x386   :  { %v1390_v61 = vpop.permute.xlu0 %1389 }
 0x387   :  { %v1420_v62 = vsel %vm1411_vm10, %v966_v2, %v1390_v61  ;;  %v1384_v10 = vpop.permute.xlu1 %1383  ;;  %v1441_v19 = vmax.f32 %v1437_v36, 0.0 }
 0x388   :  { %v1419_v11 = vsel %vm1417_vm11, %v1416_v51, %v1384_v10  ;;  %v1422_v3 = vsel %vm1414_vm12, %v1420_v62, %v1398_v26  ;;  %v2037_v10 = vld [vmem:[%s3495_s11] sm:$0xff] }
 0x389   :  { %v1439_v27 = vadd.f32 %v1430_v23, %v1419_v11  ;;  %v2039_v11 = vld [vmem:[%s3495_s11 + $0x10] sm:$0xff] }
 0x38a   :  { %v1406_v18 = vpop.permute.xlu0 %1405 }
 0x38b   :  { %v1443_v55 = vmax.f32 %v1439_v27, 0.0  ;;  %v1424_v22 = vsel %vm1417_vm11, %v1422_v3, %v1406_v18  ;;  %v2512_v27 = vpack.c.bf16 %v2040_v14, %v2039_v11 }
 0x38c   :  { %v1438_v48 = vadd.f32 %v1434_v13, %v1424_v22 }
 0x38d   :  { %v2499_v20 = vpack.c.bf16 %v1443_v55, %v1441_v19 }
 0x38e   :  { %v1442_v39 = vmax.f32 %v1438_v48, 0.0  ;;  %v1408_v24 = vpop.permute.xlu0 %1407 }
 0x38f   :  { %v1425_v29 = vsel %vm1417_vm11, %v1423_v59, %v1408_v24 }
 0x390   :  { %v1440_v31 = vadd.f32 %v1434_v13, %v1425_v29  ;;  %1606 = vmatprep.mubr.f32.mxu0 %v1442_v39  ;;  %1681 = vmatprep.mubr.f32.mxu1 %v1442_v39  ;;  %v2509_v13 = vpack.c.bf16 %v2038_v17, %v2037_v10 }
 0x391   :  { %1607 = vmatmul.mubr.f32.vlgmr.msra.gmra.mrb[12].mxu0 %v1441_v19  ;;  %1682 = vmatmul.mubr.f32.vlgmr.msra.gmra.mrb[12].mxu1 %v1441_v19 }
 0x392   :  { %v1444_v16 = vmax.f32 %v1440_v31, 0.0  ;;  %v1963_v31 = vld [vmem:[%s3486_s2] sm:$0x3]  ;;  %s2727_s2 = smov [#allocation2]  }
 0x394   :  { %1611 = vmatprep.mubr.f32.mxu0 %v1444_v16  ;;  %1686 = vmatprep.mubr.f32.mxu1 %v1444_v16  ;;  %v2497_v58 = vpack.c.bf16 %v1444_v16, %v1442_v39 }
 0x395   :  { %1612 = vmatmul.mubr.f32.gmra.mrb[14].mxu0 %v1443_v55  ;;  %1687 = vmatmul.mubr.f32.gmra.mrb[14].mxu1 %v1443_v55 }
 0x396   :  { %2498 = vmatprep.subr.bf16.mxu0 %v2497_v58 }
 0x397   :  { %2500 = vmatpush1.bf16.xpose.msra.mxu0 %v2499_v20 }
 0x398   :  { %2505 = vmatprep.subr.bf16.mxu0 %v2714_v7 }
 0x39f   :  { %2612 = vset.pattern.permute.xlu0 %v2715_v8 }
 0x3ba   :  { %v2606_v1 = vpop.trf.xlu0 }
 0x3bb   :  { %v2610_v28 = vunpack.i.h.bf16 %v2606_v1  ;;  %v2607_v5 = vunpack.i.l.bf16 %v2606_v1  ;;  %v2176_v1 = vld [vmem:[%s3496_s12] ss:$0 sm:$0xff]  ;;  %s2141_s12 = sshll.u32 %s2727_s2, 4  ;;  %s2142_s12 = int_to_ptr.vmem [resolvable:$true] %s2141_s12 }
 0x3bc   :  { %s2689_s4 = scalar_lea.vmem %s2142_s12, 32  ;;  %p2694_p1 = scmp.lt.s32.totalorder %s2142_s12, %s2142_s12 }
 0x3bd   :  { %1820 = vmatprep.mubr.f32.mxu0 %v2607_v5  ;;  %p2690_p0 = scmp.ne.s32.totalorder %s2142_s12, %s2689_s4  ;;  %p2695_p2 = scmp.lt.s32.totalorder %s2689_s4, %s2689_s4 }
 0x3be   :  { %1821 = vmatmul.mubr.f32.vlgmr.msra.gmra.mrb[16].mxu0 %v2610_v28 }
 0x3bf   :  { %2383 = vmatprep.mubr.msk.f32.mxu0 %vm2716_vm2, %v2713_v6  ;;  %p2696_p3 = por %p2695_p2, %p2694_p1 }
 0x3c1   :  { %p2697_p4 = pnand %p2696_p3, %p2690_p0 }
 0x464   :  { %v2248_v33 = vpop.f32.mrb[12].mxu0  ;;  %v2286_v46 = vpop.f32.mrb[12].mxu1 }
 0x465   :  { %v2249_v54 = vpop.f32.mrb[13].mxu0  ;;  %v2287_v35 = vpop.f32.mrb[13].mxu1 }
 0x466   :  { %v2250_v38 = vadd.f32 %v2249_v54, %v2248_v33  ;;  %v2288_v12 = vadd.f32 %v2287_v35, %v2286_v46 }
 0x468   :  { %1828 = vperm.xlu1 %2611, %v2288_v12   ;;  %v2251_v15 = vpop.f32.mrb[14].mxu0  ;;  %v2289_v63 = vpop.f32.mrb[14].mxu1 }
 0x469   :  { %v2252_v25 = vpop.f32.mrb[15].mxu0  ;;  %v2290_v41 = vpop.f32.mrb[15].mxu1 }
 0x46a   :  { %v2253_v8 = vadd.f32 %v2252_v25, %v2251_v15  ;;  %v2291_v56 = vadd.f32 %v2290_v41, %v2289_v63 }
 0x46c   :  { %v2501_v52 = vpack.c.bf16 %v2253_v8, %v2250_v38  ;;  %1833 = vperm.xlu1 %2611, %v2291_v56  }
 0x46e   :  { %2502 = vmatprep.subr.bf16.mxu1 %v2501_v52 }
 0x46f   :  { %2504 = vmatpush3.bf16.msra.mxu1 %v2501_v52 }
 0x470   :  { %2508 = vmatprep.subr.bf16.mxu1 %v2714_v7 }
 0x491   :  { %v1822_v34 = vpop.f32.mrb[16].mxu0 }
 0x492   :  { %v1824_v42 = vpop.f32.mrb[17].mxu0  ;;  %v1839_v43 = vrot.slane %v1822_v34, %v2843_v30 }
 0x4e7   :  { %v1829_v44 = vpop.permute.xlu1 %1828 }
 0x4e8   :  { %v1840_v45 = vadd.f32 %v1839_v43, %v1829_v44 }
 0x4ea   :  { %v1844_v26 = vmul.f32 0.2, %v1840_v45  ;;  %vm1842_vm13 = vcmp.gt.f32.partialorder %v1840_v45, 0.0 }
 0x4eb   :  { %v1834_v32 = vpop.permute.xlu1 %1833 }
 0x4ec   :  { %v1841_v47 = vadd.f32 %v1839_v43, %v1834_v32  ;;  %v1846_v4 = vsel %vm1842_vm13, %v1840_v45, %v1844_v26 }
 0x4ed   :  { %v1848_v57 = vsel %vm340_vm8, %v1846_v4, -1e+30 }
 0x4ee   :  { %v1845_v53 = vmul.f32 0.2, %v1841_v47  ;;  %v1850_v49 = vsel %vm344_vm5, %v1848_v57, -inf  ;;  %vm1843_vm14 = vcmp.gt.f32.partialorder %v1841_v47, 0.0 }
 0x4ef   :  { %1851 = vmax.xlane.f32.xlu1 %v1850_v49 }
 0x4f0   :  { %v1847_v23 = vsel %vm1843_vm14, %v1841_v47, %v1845_v53 }
 0x4f1   :  { %v1849_v40 = vsel %vm341_vm4, %v1847_v23, -1e+30 }
 0x4f2   :  { %v1853_v30 = vsel %vm344_vm5, %v1849_v40, -inf }
 0x4f3   :  { %1854 = vmax.xlane.f32.xlu1 %v1853_v30 }
 0x57c   :  { %v1852_v60 = vpop.xlane.xlu1 %1851 }
 0x57d   :  { %v1856_v9 = vsub.f32 %v1848_v57, %v1852_v60 }
 0x57f   :  { %v1858_v0 = vmul.f32 1.442695, %v1856_v9 }
 0x580   :  { %v1855_v2 = vpop.xlane.xlu1 %1854 }
 0x581   :  { %2677 = vpow2.f32 %v1858_v0  ;;  %v1857_v61 = vsub.f32 %v1849_v40, %v1855_v2 }
 0x583   :  { %v1860_v50 = vmul.f32 1.442695, %v1857_v61 }
 0x585   :  { %2679 = vpow2.f32 %v1860_v50 }
 0x58b   :  { %v2678_v36 = vpop.eup %2677 }
 0x58c   :  { %2376 = vmatprep.mubr.msk.f32.mxu1 %vm344_vm5, %v2678_v36  ;;  %v1862_v62 = vsel %vm344_vm5, %v2678_v36, 0.0 }
 0x58d   :  { %1863 = vadd.xlane.f32.xlu1 %v1862_v62 }
 0x58f   :  { %v2680_v51 = vpop.eup %2679 }
 0x590   :  { %2377 = vmatmul.mubr.msk.f32.vlgmr.msra.gmra.mrb[16].mxu1 %vm344_vm5, %v2680_v51  ;;  %v1865_v37 = vsel %vm344_vm5, %v2680_v51, 0.0 }
 0x591   :  { %1866 = vadd.xlane.f32.xlu1 %v1865_v37  ;;  %2394 = vmatprep.mubr.msk.f32.mxu1 %vm2716_vm2, %v2713_v6  ;;  %vm2121_vm2 = vcmask 25600  }
 0x592   :  { %2510 = vmatpush3.bf16.msra.mxu1 %v2509_v13 }
 0x593   :  { %2511 = vmatprep.subr.bf16.mxu1 %v2714_v7 }
 0x596   :  { %2513 = vmatpush3.bf16.msra.mxu1 %v2512_v27 }
 0x61a   :  { %v1864_v6 = vpop.xlane.xlu1 %1863 }
 0x61e   :  { %v1867_v18 = vpop.xlane.xlu1 %1866 }
 0x61f   :  { %2681 = vrcp.f32 %v1867_v18 }
 0x620   :  { %2683 = vrcp.f32 %v1864_v6 }
 0x629   :  { %v2682_v3 = vpop.eup %2681 }
 0x62a   :  { %v2684_v55 = vpop.eup %2683 }
 0x663   :  { %v2378_v19 = vpop.f32.mrb[16].mxu1 }
 0x664   :  { %v1952_v22 = vmul.f32 %v2682_v3, %v2378_v19  ;;  %v1940_v48 = vpop.f32.mrb[17].mxu1 }
 0x665   :  { %v1951_v20 = vmul.f32 %v2684_v55, %v1940_v48 }
 0x666   :  { %v1960_v39 = vadd.f32 %v2174_v21, %v1952_v22 }
 0x667   :  { %v1959_v59 = vadd.f32 %v2174_v21, %v1951_v20 }
 0x668   :  { %v1962_v24 = vmax.f32 %v1960_v39, 0.0 }
 0x669   :  { %v1961_v29 = vmax.f32 %v1959_v59, 0.0 }
 0x66b   :  { %v2506_v7 = vpack.c.bf16 %v1962_v24, %v1961_v29 }
 0x66d   :  { %2507 = vmatpush3.bf16.msra.mxu0 %v2506_v7 }
 0x670   :  { %2384 = vmatmul.mubr.msk.f32.vlgmr.msra.gmra.mrb[18].mxu0 %vm344_vm5, %v1963_v31 }
 0x743   :  { %v2033_v16 = vpop.f32.mrb[18].mxu0 }
 0x744   :  { %v2385_v58 = vpop.f32.mrb[19].mxu0  ;;  %2395 = vmatmul.mubr.msk.f32.vlgmr.msra.gmra.mrb[18].mxu1 %vm1411_vm10, %v2033_v16 }
 0x817   :  { %v2117_v28 = vpop.f32.mrb[18].mxu1 }
 0x818   :  { %v2118_v5 = vadd.f32 %v2176_v1, %v2117_v28  ;;  %v2396_v33 = vpop.f32.mrb[19].mxu1 }
 0x81a   :  { %v2122_v46 = vsel %vm2121_vm2, %v2118_v5, -inf }
 0x81b   :  { %2123 = vmax.xlane.f32.xlu1 %v2122_v46 }
 0x8a8   :  { %v2124_v54 = vpop.xlane.xlu1 %2123 }
 0x8a9   :  { %v2125_v35 = vsub.f32 %v2118_v5, %v2124_v54 }
 0x8ab   :  { %v2126_v38 = vmul.f32 1.442695, %v2125_v35 }
 0x8ad   :  { %2685 = vpow2.f32 %v2126_v38 }
 0x8b7   :  { %v2686_v12 = vpop.eup %2685 }
 0x8b8   :  { %v2128_v15 = vsel %vm2121_vm2, %v2686_v12, 0.0 }
 0x8b9   :  { %2129 = vadd.xlane.f32.xlu1 %v2128_v15 }
 0x946   :  { %v2130_v63 = vpop.xlane.xlu1 %2129 }
 0x947   :  { %2687 = vlog2.f32 %v2130_v63 }
 0x951   :  { %v2688_v25 = vpop.eup %2687 }
 0x952   :  { %v2132_v41 = vmul.f32 0.6931472, %v2688_v25 }
 0x954   :  { %v2133_v8 = vsub.f32 %v2125_v35, %v2132_v41 }
 0x956   :  { %2134 = vst.msk [vmem:[#allocation2] sm:$0x3] %vm2121_vm2, %v2133_v8 }
 0x957   :  { %2700 = shalt.err (!%p2697_p4)
}
 0x958   :  { %s2701_s21 = scalar_lea.hbm %s3497_s13, 32 }
 0x959   :  { %p2702_p5 = scmp.ne.s32.totalorder %s3497_s13, %s2701_s21  ;;  %p2705_p6 = scmp.lt.u32.totalorder %s2701_s21, %s3497_s13 }
 0x95b   :  { %p2707_p7 = pnand %p2705_p6, %p2702_p5 }
 0x95d   :  { %2710 = shalt.err (!%p2707_p7)
}
 0x95e   :  { %2144 = dma.vmem_to_hbm [thread:$0]  %s2142_s12, 32, %s3497_s13, [#allocation3]  }
 0x95f   :  { %2711 = dma.done.wait [#allocation3], 32  }
 0x960   :  { %2712 = vsyncadd [#allocation3], 4294967264 }
 0x961   :  { %2148 = vsyncpa [#allocation3], 1 }

</bundles_post_ra>
